<compile_context>
chip_gen: v7x
topology: tpu7x:2x2x1
jax: 0.10.0
libtpu: 0.0.40
codegen_flags: <defaults>
</compile_context>

<pallas_src>
import math

import jax
import jax.numpy as jnp
from jax import lax
from jax.experimental import pallas as pl
from jax.experimental.pallas import tpu as pltpu

D        = 8        # embedding_dim
FF       = 2048     # nn.TransformerEncoderLayer default dim_feedforward
KPAD     = 16       # FFN contraction dim padded to the bf16 sublane tile
EPS      = 1e-5     # layer_norm_eps default
NEG      = -1e30    # finite stand-in for -inf key-padding masking
TILE_MAX = 512      # sequences per grid step (multiple of 128; 512 fits VMEM everywhere)
PM_W     = 128      # lane width of the packed parameter table (requires S <= 128)


def _round_up(x, m):
    return (x + m - 1) // m * m


def _ln_cols(z, g, b):
    """LayerNorm over the feature axis (axis 0) of a (D, tile) tile."""
    mu = jnp.mean(z, axis=0, keepdims=True)
    var = jnp.mean((z - mu) ** 2, axis=0, keepdims=True)
    return (z - mu) * lax.rsqrt(var + EPS) * g + b


def transformer_kernel(x_ref, mb_ref, pmat_ref, w1_ref, w2_ref, out_ref):
    xT = x_ref[0]          # (S, T): x[t*tile + b, s] at [s, b]
    mbias = mb_ref[0]      # (S, T): additive mask bias (NEG where padded, else 0)
    S, T = xT.shape
    Spad = _round_up(S, 8)

    # ---- unpack the packed parameter table --------------------------------
    ckt = pmat_ref[0:S, 0:D]                    # (S, D)  Wk^T @ base_s + bk (transposed)
    cv = pmat_ref[Spad:Spad + D, 0:S]           # (D, S)  Wv^T @ base_s + bv
    woT = pmat_ref[Spad + 8:Spad + 16, 0:D]     # (D, D)
    vt = pmat_ref[Spad + 16:Spad + 24, :]       # (D, 128) vector table

    def vec(j):
        return vt[:, j:j + 1]                   # (D, 1)

    w_emb, wq_emb, wk_emb, wv_emb = vec(0), vec(1), vec(2), vec(3)
    cq, base_last, bo, b2 = vec(4), vec(5), vec(6), vec(7)
    g1, be1, g2, be2, wout = vec(8), vec(9), vec(10), vec(11), vec(12)
    bout = vt[0:1, 13:14]                       # (1, 1)

    x_last = xT[S - 1:S, :]                     # (1, T)

    # ---- single-head self-attention, last query position only -------------
    # q = scale * (Wq^T h_last + bq) collapsed to a rank-1 update (scale folded in)
    q = wq_emb * x_last + cq                                      # (D, T)
    # scores[s] = <q, k_s> with k_s = wk_emb * x_s + ck_s
    qk = jnp.sum(wk_emb * q, axis=0, keepdims=True)               # (1, T)
    scores = xT * qk + jnp.dot(ckt, q, preferred_element_type=jnp.float32)  # (S, T)
    scores = scores + mbias

    m = jnp.max(scores, axis=0, keepdims=True)
    e = jnp.exp(scores - m)
    denom = jnp.sum(e, axis=0, keepdims=True)
    attn = e * pl.reciprocal(denom, approx=True)                  # (S, T)

    # ctx = sum_s attn_s * v_s with v_s = wv_emb * x_s + cv_s
    ax = jnp.sum(attn * xT, axis=0, keepdims=True)                # (1, T)
    ctx = wv_emb * ax + jnp.dot(cv, attn, preferred_element_type=jnp.float32)
    attn_out = jnp.dot(woT, ctx, preferred_element_type=jnp.float32) + bo

    # post-norm residual 1 (last position only)
    h_last = w_emb * x_last + base_last
    h1 = _ln_cols(h_last + attn_out, g1, be1)                     # (D, T)

    # ---- feed-forward: bf16 MXU operands, f32 accumulation, dropout = id ---
    # b1 folded in as weight row D of w1 (ones row in the activation, K = 16)
    one_row = (lax.broadcasted_iota(jnp.int32, (KPAD - D, T), 0) == 0).astype(jnp.float32)
    h1aug = jnp.concatenate([h1, one_row], axis=0).astype(jnp.bfloat16)      # (16, T)
    f = lax.dot_general(w1_ref[...], h1aug,
                        dimension_numbers=(((0,), (0,)), ((), ())),
                        preferred_element_type=jnp.float32)                  # (FF, T)
    f = jnp.maximum(f, 0.0).astype(jnp.bfloat16)
    f2 = jnp.dot(w2_ref[...], f, preferred_element_type=jnp.float32)         # (16, T)
    f2 = f2[0:D, :] + b2

    # post-norm residual 2
    h2 = _ln_cols(h1 + f2, g2, be2)

    # output head -> lane-dense (1, T) row
    out_ref[0] = jnp.sum(wout * h2, axis=0, keepdims=True) + bout


def positional_encoding(seq_length, d_model):
    position = jnp.arange(seq_length, dtype=jnp.float32)[:, None]
    div_term = jnp.exp(jnp.arange(0, d_model, 2, dtype=jnp.float32)
                       * (-(math.log(10000.0) / d_model)))
    ang = position * div_term
    pe = jnp.zeros((seq_length, d_model), jnp.float32)
    pe = pe.at[:, 0::2].set(jnp.sin(ang))
    pe = pe.at[:, 1::2].set(jnp.cos(ang))
    return pe


def init_params(key):
    ks = jax.random.split(key, 16)

    def norm(k, shape, scale=0.1):
        return scale * jax.random.normal(k, shape, dtype=jnp.float32)

    # weights stored pre-transposed (in_features, out_features)
    return dict(
        w_emb=norm(ks[0], (1, D)),   b_emb=norm(ks[1], (1, D)),
        wq=norm(ks[2], (D, D)),      bq=norm(ks[3], (1, D)),
        wk=norm(ks[4], (D, D)),      bk=norm(ks[5], (1, D)),
        wv=norm(ks[6], (D, D)),      bv=norm(ks[7], (1, D)),
        wo=norm(ks[8], (D, D)),      bo=norm(ks[9], (1, D)),
        g1=jnp.ones((1, D), jnp.float32), beta1=jnp.zeros((1, D), jnp.float32),
        w1=norm(ks[10], (D, FF)),    b1=norm(ks[11], (1, FF)),
        w2=norm(ks[12], (FF, D)),    b2=norm(ks[13], (1, D)),
        g2=jnp.ones((1, D), jnp.float32), beta2=jnp.zeros((1, D), jnp.float32),
        wout=norm(ks[14], (D, 1)),   bout=norm(ks[15], (1, 1)),
    )


def pack_params(params, S):
    """Fold embedding/PE/biases into the attention projections and pack lane-dense."""
    scale = 1.0 / math.sqrt(D)
    base = params["b_emb"] + 0.1 * positional_encoding(S, D)       # (S, D)
    w_emb = params["w_emb"].reshape(D, 1)
    wqT, wkT = params["wq"].T, params["wk"].T
    wvT, woT = params["wv"].T, params["wo"].T
    bq, bk = params["bq"].reshape(D, 1), params["bk"].reshape(D, 1)
    bv, bo = params["bv"].reshape(D, 1), params["bo"].reshape(D, 1)

    # rank-1 projection vectors (embedding input dim is 1) + per-position constants
    wq_emb = scale * (wqT @ w_emb)
    wk_emb = wkT @ w_emb
    wv_emb = wvT @ w_emb
    cq = scale * (wqT @ base[S - 1].reshape(D, 1) + bq)
    ckt = (wkT @ base.T + bk).T                                    # (S, D)
    cv = wvT @ base.T + bv                                         # (D, S)
    base_last = base[S - 1].reshape(D, 1)

    vecs = [w_emb, wq_emb, wk_emb, wv_emb, cq, base_last, bo,
            params["b2"].reshape(D, 1), params["g1"].reshape(D, 1),
            params["beta1"].reshape(D, 1), params["g2"].reshape(D, 1),
            params["beta2"].reshape(D, 1), params["wout"].reshape(D, 1),
            jnp.pad(params["bout"].reshape(1, 1), ((0, D - 1), (0, 0)))]
    vtab = jnp.concatenate(vecs, axis=1)                           # (D, 14)

    Spad = _round_up(S, 8)
    pmat = jnp.zeros((Spad + 24, PM_W), jnp.float32)
    pmat = pmat.at[0:S, 0:D].set(ckt)
    pmat = pmat.at[Spad:Spad + D, 0:S].set(cv)
    pmat = pmat.at[Spad + 8:Spad + 16, 0:D].set(woT)
    pmat = pmat.at[Spad + 16:Spad + 16 + D, 0:vtab.shape[1]].set(vtab)

    # FFN weights, lane-dense (K, FF), K padded to 16; b1 folded in as row D of w1
    w1p = jnp.zeros((KPAD, FF), jnp.float32)
    w1p = w1p.at[0:D, :].set(params["w1"])
    w1p = w1p.at[D, :].set(params["b1"].reshape(FF))
    w2p = jnp.zeros((KPAD, FF), jnp.float32)
    w2p = w2p.at[0:D, :].set(params["w2"].T)
    return pmat, w1p.astype(jnp.bfloat16), w2p.astype(jnp.bfloat16)


@jax.jit
def float_sequence_transformer(x, key_padding_mask, params):
    B, S, _ = x.shape
    assert S <= PM_W, "packed parameter table assumes seq_length <= 128"
    tile = min(TILE_MAX, _round_up(B, 128))
    num_tiles = pl.cdiv(B, tile)
    Bp = num_tiles * tile

    # pad batch to a multiple of tile; padded rows are unmasked, all-zero inputs.
    # TODO(synk): the host-side transpose re-reads the input once in HBM; acceptable
    # here, the kernel-side DMA stays dense (S, tile).
    x2 = jnp.pad(x[..., 0].astype(jnp.float32), ((0, Bp - B), (0, 0)))        # (Bp, S)
    mb = jnp.pad(key_padding_mask, ((0, Bp - B), (0, 0)))
    mb = jnp.where(mb, jnp.float32(NEG), jnp.float32(0.0))                    # additive bias
    xT = x2.reshape(num_tiles, tile, S).transpose(0, 2, 1)                    # (nt, S, tile)
    mbT = mb.reshape(num_tiles, tile, S).transpose(0, 2, 1)                   # (nt, S, tile)

    pmat, w1p, w2p = pack_params(params, S)

    out = pl.pallas_call(
        transformer_kernel,
        out_shape=jax.ShapeDtypeStruct((num_tiles, 1, tile), jnp.float32),
        grid=(num_tiles,),
        in_specs=[
            pl.BlockSpec((1, S, tile), lambda t: (t, 0, 0)),   # x   (batch tile)
            pl.BlockSpec((1, S, tile), lambda t: (t, 0, 0)),   # additive mask bias
            pl.BlockSpec(pmat.shape, lambda t: (0, 0)),        # packed small params
            pl.BlockSpec(w1p.shape, lambda t: (0, 0)),         # FFN W1|b1 (bf16, lane-dense)
            pl.BlockSpec(w2p.shape, lambda t: (0, 0)),         # FFN W2     (bf16, lane-dense)
        ],
        out_specs=pl.BlockSpec((1, 1, tile), lambda t: (t, 0, 0)),
        compiler_params=pltpu.CompilerParams(
            dimension_semantics=("parallel",)),
    )(xT, mbT, pmat, w1p, w2p)

    return out.reshape(-1)[:B].reshape(B, 1)


# ---------------------------- pure-JAX reference ----------------------------
def _ln_rows(x, g, b):
    mu = jnp.mean(x, axis=-1, keepdims=True)
    var = jnp.mean((x - mu) ** 2, axis=-1, keepdims=True)
    return (x - mu) * lax.rsqrt(var + EPS) * g + b


def reference(x, kpm, params):
    pe = positional_encoding(x.shape[1], D)
    h = x * params["w_emb"] + params["b_emb"] + 0.1 * pe
    q = h @ params["wq"] + params["bq"]
    k = h @ params["wk"] + params["bk"]
    v = h @ params["wv"] + params["bv"]
    scores = jnp.einsum("bqd,bkd->bqk", q, k) / math.sqrt(D)
    scores = jnp.where(kpm[:, None, :], NEG, scores)
    attn = jax.nn.softmax(scores, axis=-1)
    ao = jnp.einsum("bqk,bkd->bqd", attn, v) @ params["wo"] + params["bo"]
    h1 = _ln_rows(h + ao, params["g1"], params["beta1"])
    f = jax.nn.relu(h1 @ params["w1"] + params["b1"]) @ params["w2"] + params["b2"]
    h2 = _ln_rows(h1 + f, params["g2"], params["beta2"])
    y = h2 @ params["wout"] + params["bout"]
    return y[:, -1, :]


if __name__ == "__main__":
    B, S = 2, 8
    key = jax.random.PRNGKey(0)
    k_x, k_p = jax.random.split(key)

    x = jax.random.normal(k_x, (B, S, 1), dtype=jnp.float32)
    # key_padding_mask: True = padded key (second sequence has 2 padded tail positions)
    key_padding_mask = jnp.array(
        [[False] * S,
         [False] * (S - 2) + [True] * 2], dtype=jnp.bool_)

    params = init_params(k_p)

    out = jax.block_until_ready(float_sequence_transformer(x, key_padding_mask, params))
    ref = reference(x, key_padding_mask, params)

    assert out.shape == (B, 1)
    assert jnp.allclose(out, ref, atol=1e-2, rtol=1e-2), (out, ref)

    # TODO(synk): dropout layers are treated as identity (eval-mode semantics).
    print("KERNEL_OK")
</pallas_src>

<mosaic_0001>
module attributes {stable_mosaic.version = 11 : i64} {
  func.func @transformer_kernel(%arg0: i32, %arg1: memref<1x8x128xf32, #tpu.memory_space<vmem>>, %arg2: memref<1x8x128xf32, #tpu.memory_space<vmem>>, %arg3: memref<32x128xf32, #tpu.memory_space<vmem>>, %arg4: memref<16x2048xbf16, #tpu.memory_space<vmem>>, %arg5: memref<16x2048xbf16, #tpu.memory_space<vmem>>, %arg6: memref<1x1x128xf32, #tpu.memory_space<vmem>>) attributes {dimension_semantics = [#tpu.dimension_semantics<parallel>], iteration_bounds = array<i64: 1>, scalar_prefetch = 0 : i64, scratch_operands = 0 : i64, tpu.core_type = #tpu.core_type<tc>, window_params = [{transform_indices = @transform_0, window_bounds = array<i64: 1, 8, 128>}, {transform_indices = @transform_1, window_bounds = array<i64: 1, 8, 128>}, {pipeline_mode = #tpu.pipeline_mode<synchronous>, transform_indices = @transform_2, window_bounds = array<i64: 32, 128>}, {pipeline_mode = #tpu.pipeline_mode<synchronous>, transform_indices = @transform_3, window_bounds = array<i64: 16, 2048>}, {pipeline_mode = #tpu.pipeline_mode<synchronous>, transform_indices = @transform_4, window_bounds = array<i64: 16, 2048>}, {transform_indices = @transform_5, window_bounds = array<i64: 1, 1, 128>}]} {
    %c0 = arith.constant 0 : index
    %c0_0 = arith.constant 0 : index
    %c0_1 = arith.constant 0 : index
    %0 = vector.load %arg1[%c0, %c0_0, %c0_1] : memref<1x8x128xf32, #tpu.memory_space<vmem>>, vector<1x8x128xf32>
    %1 = vector.shape_cast %0 : vector<1x8x128xf32> to vector<8x128xf32>
    %c0_2 = arith.constant 0 : index
    %c0_3 = arith.constant 0 : index
    %c0_4 = arith.constant 0 : index
    %2 = vector.load %arg2[%c0_2, %c0_3, %c0_4] : memref<1x8x128xf32, #tpu.memory_space<vmem>>, vector<1x8x128xf32>
    %3 = vector.shape_cast %2 : vector<1x8x128xf32> to vector<8x128xf32>
    %c0_5 = arith.constant 0 : index
    %c0_6 = arith.constant 0 : index
    %4 = vector.load %arg3[%c0_5, %c0_6] : memref<32x128xf32, #tpu.memory_space<vmem>>, vector<8x8xf32>
    %c8 = arith.constant 8 : index
    %c0_7 = arith.constant 0 : index
    %5 = vector.load %arg3[%c8, %c0_7] : memref<32x128xf32, #tpu.memory_space<vmem>>, vector<8x8xf32>
    %c16 = arith.constant 16 : index
    %c0_8 = arith.constant 0 : index
    %6 = vector.load %arg3[%c16, %c0_8] : memref<32x128xf32, #tpu.memory_space<vmem>>, vector<8x8xf32>
    %c24 = arith.constant 24 : index
    %c0_9 = arith.constant 0 : index
    %7 = vector.load %arg3[%c24, %c0_9] : memref<32x128xf32, #tpu.memory_space<vmem>>, vector<8x128xf32>
    %8 = vector.extract_strided_slice %7 {offsets = [0, 0], sizes = [8, 1], strides = [1, 1]} : vector<8x128xf32> to vector<8x1xf32>
    %9 = vector.extract_strided_slice %7 {offsets = [0, 1], sizes = [8, 1], strides = [1, 1]} : vector<8x128xf32> to vector<8x1xf32>
    %10 = vector.extract_strided_slice %7 {offsets = [0, 2], sizes = [8, 1], strides = [1, 1]} : vector<8x128xf32> to vector<8x1xf32>
    %11 = vector.extract_strided_slice %7 {offsets = [0, 3], sizes = [8, 1], strides = [1, 1]} : vector<8x128xf32> to vector<8x1xf32>
    %12 = vector.extract_strided_slice %7 {offsets = [0, 4], sizes = [8, 1], strides = [1, 1]} : vector<8x128xf32> to vector<8x1xf32>
    %13 = vector.extract_strided_slice %7 {offsets = [0, 5], sizes = [8, 1], strides = [1, 1]} : vector<8x128xf32> to vector<8x1xf32>
    %14 = vector.extract_strided_slice %7 {offsets = [0, 6], sizes = [8, 1], strides = [1, 1]} : vector<8x128xf32> to vector<8x1xf32>
    %15 = vector.extract_strided_slice %7 {offsets = [0, 7], sizes = [8, 1], strides = [1, 1]} : vector<8x128xf32> to vector<8x1xf32>
    %16 = vector.extract_strided_slice %7 {offsets = [0, 8], sizes = [8, 1], strides = [1, 1]} : vector<8x128xf32> to vector<8x1xf32>
    %17 = vector.extract_strided_slice %7 {offsets = [0, 9], sizes = [8, 1], strides = [1, 1]} : vector<8x128xf32> to vector<8x1xf32>
    %18 = vector.extract_strided_slice %7 {offsets = [0, 10], sizes = [8, 1], strides = [1, 1]} : vector<8x128xf32> to vector<8x1xf32>
    %19 = vector.extract_strided_slice %7 {offsets = [0, 11], sizes = [8, 1], strides = [1, 1]} : vector<8x128xf32> to vector<8x1xf32>
    %20 = vector.extract_strided_slice %7 {offsets = [0, 12], sizes = [8, 1], strides = [1, 1]} : vector<8x128xf32> to vector<8x1xf32>
    %21 = vector.extract_strided_slice %7 {offsets = [0, 13], sizes = [1, 1], strides = [1, 1]} : vector<8x128xf32> to vector<1x1xf32>
    %22 = vector.extract_strided_slice %1 {offsets = [7, 0], sizes = [1, 128], strides = [1, 1]} : vector<8x128xf32> to vector<1x128xf32>
    %23 = vector.broadcast %9 : vector<8x1xf32> to vector<8x128xf32>
    %24 = vector.broadcast %22 : vector<1x128xf32> to vector<8x128xf32>
    %25 = arith.mulf %23, %24 : vector<8x128xf32>
    %26 = vector.broadcast %12 : vector<8x1xf32> to vector<8x128xf32>
    %27 = arith.addf %25, %26 : vector<8x128xf32>
    %28 = vector.broadcast %10 : vector<8x1xf32> to vector<8x128xf32>
    %29 = arith.mulf %28, %27 : vector<8x128xf32>
    %cst = arith.constant dense<0.000000e+00> : vector<128xf32>
    %30 = vector.multi_reduction <add>, %29, %cst [0] : vector<8x128xf32> to vector<128xf32>
    %31 = vector.shape_cast %30 : vector<128xf32> to vector<1x128xf32>
    %32 = vector.broadcast %31 : vector<1x128xf32> to vector<8x128xf32>
    %33 = arith.mulf %1, %32 : vector<8x128xf32>
    %cst_10 = arith.constant dense<0.000000e+00> : vector<8x128xf32>
    %34 = tpu.matmul %4, %27, %cst_10 {dimension_numbers = #tpu.dot_dimension_numbers<[1], [0], [0], [1], [0, 0, 1, 1], [], []>} : vector<8x8xf32>, vector<8x128xf32>, vector<8x128xf32> -> vector<8x128xf32>
    %35 = arith.addf %33, %34 : vector<8x128xf32>
    %36 = arith.addf %35, %3 : vector<8x128xf32>
    %cst_11 = arith.constant dense<0xFF800000> : vector<128xf32>
    %37 = vector.multi_reduction <maximumf>, %36, %cst_11 [0] : vector<8x128xf32> to vector<128xf32>
    %38 = vector.shape_cast %37 : vector<128xf32> to vector<1x128xf32>
    %39 = vector.broadcast %38 : vector<1x128xf32> to vector<8x128xf32>
    %40 = arith.subf %36, %39 : vector<8x128xf32>
    %41 = math.exp %40 : vector<8x128xf32>
    %cst_12 = arith.constant dense<0.000000e+00> : vector<128xf32>
    %42 = vector.multi_reduction <add>, %41, %cst_12 [0] : vector<8x128xf32> to vector<128xf32>
    %43 = vector.shape_cast %42 : vector<128xf32> to vector<1x128xf32>
    %44 = tpu.reciprocal %43 {approx = true} : vector<1x128xf32> -> vector<1x128xf32>
    %45 = vector.broadcast %44 : vector<1x128xf32> to vector<8x128xf32>
    %46 = arith.mulf %41, %45 : vector<8x128xf32>
    %47 = arith.mulf %46, %1 : vector<8x128xf32>
    %cst_13 = arith.constant dense<0.000000e+00> : vector<128xf32>
    %48 = vector.multi_reduction <add>, %47, %cst_13 [0] : vector<8x128xf32> to vector<128xf32>
    %49 = vector.shape_cast %48 : vector<128xf32> to vector<1x128xf32>
    %50 = vector.broadcast %11 : vector<8x1xf32> to vector<8x128xf32>
    %51 = vector.broadcast %49 : vector<1x128xf32> to vector<8x128xf32>
    %52 = arith.mulf %50, %51 : vector<8x128xf32>
    %cst_14 = arith.constant dense<0.000000e+00> : vector<8x128xf32>
    %53 = tpu.matmul %5, %46, %cst_14 {dimension_numbers = #tpu.dot_dimension_numbers<[1], [0], [0], [1], [0, 0, 1, 1], [], []>} : vector<8x8xf32>, vector<8x128xf32>, vector<8x128xf32> -> vector<8x128xf32>
    %54 = arith.addf %52, %53 : vector<8x128xf32>
    %cst_15 = arith.constant dense<0.000000e+00> : vector<8x128xf32>
    %55 = tpu.matmul %6, %54, %cst_15 {dimension_numbers = #tpu.dot_dimension_numbers<[1], [0], [0], [1], [0, 0, 1, 1], [], []>} : vector<8x8xf32>, vector<8x128xf32>, vector<8x128xf32> -> vector<8x128xf32>
    %56 = vector.broadcast %14 : vector<8x1xf32> to vector<8x128xf32>
    %57 = arith.addf %55, %56 : vector<8x128xf32>
    %58 = vector.broadcast %8 : vector<8x1xf32> to vector<8x128xf32>
    %59 = vector.broadcast %22 : vector<1x128xf32> to vector<8x128xf32>
    %60 = arith.mulf %58, %59 : vector<8x128xf32>
    %61 = vector.broadcast %13 : vector<8x1xf32> to vector<8x128xf32>
    %62 = arith.addf %60, %61 : vector<8x128xf32>
    %63 = arith.addf %62, %57 : vector<8x128xf32>
    %cst_16 = arith.constant dense<0.000000e+00> : vector<128xf32>
    %64 = vector.multi_reduction <add>, %63, %cst_16 [0] : vector<8x128xf32> to vector<128xf32>
    %65 = vector.shape_cast %64 : vector<128xf32> to vector<1x128xf32>
    %cst_17 = arith.constant 8.000000e+00 : f32
    %66 = vector.broadcast %cst_17 : f32 to vector<1x128xf32>
    %67 = arith.divf %65, %66 : vector<1x128xf32>
    %68 = vector.broadcast %67 : vector<1x128xf32> to vector<8x128xf32>
    %69 = arith.subf %63, %68 : vector<8x128xf32>
    %70 = arith.mulf %69, %69 : vector<8x128xf32>
    %cst_18 = arith.constant dense<0.000000e+00> : vector<128xf32>
    %71 = vector.multi_reduction <add>, %70, %cst_18 [0] : vector<8x128xf32> to vector<128xf32>
    %72 = vector.shape_cast %71 : vector<128xf32> to vector<1x128xf32>
    %cst_19 = arith.constant 8.000000e+00 : f32
    %73 = vector.broadcast %cst_19 : f32 to vector<1x128xf32>
    %74 = arith.divf %72, %73 : vector<1x128xf32>
    %75 = vector.broadcast %67 : vector<1x128xf32> to vector<8x128xf32>
    %76 = arith.subf %63, %75 : vector<8x128xf32>
    %cst_20 = arith.constant 9.99999974E-6 : f32
    %77 = vector.broadcast %cst_20 : f32 to vector<1x128xf32>
    %78 = arith.addf %74, %77 : vector<1x128xf32>
    %79 = math.rsqrt %78 : vector<1x128xf32>
    %80 = vector.broadcast %79 : vector<1x128xf32> to vector<8x128xf32>
    %81 = arith.mulf %76, %80 : vector<8x128xf32>
    %82 = vector.broadcast %16 : vector<8x1xf32> to vector<8x128xf32>
    %83 = arith.mulf %81, %82 : vector<8x128xf32>
    %84 = vector.broadcast %17 : vector<8x1xf32> to vector<8x128xf32>
    %85 = arith.addf %83, %84 : vector<8x128xf32>
    %86 = tpu.iota {dimensions = array<i32: 0>} : vector<8x128xi32>
    %c0_i32 = arith.constant 0 : i32
    %87 = vector.broadcast %c0_i32 : i32 to vector<8x128xi32>
    %88 = arith.cmpi eq, %86, %87 : vector<8x128xi32>
    %89 = arith.extui %88 : vector<8x128xi1> to vector<8x128xi32>
    %90 = arith.sitofp %89 : vector<8x128xi32> to vector<8x128xf32>
    %91 = tpu.concatenate %85, %90 in 0 : vector<8x128xf32>, vector<8x128xf32> -> vector<16x128xf32>
    %92 = arith.truncf %91 : vector<16x128xf32> to vector<16x128xbf16>
    %c0_21 = arith.constant 0 : index
    %c0_22 = arith.constant 0 : index
    %93 = vector.load %arg4[%c0_21, %c0_22] : memref<16x2048xbf16, #tpu.memory_space<vmem>>, vector<16x2048xbf16>
    %cst_23 = arith.constant dense<0.000000e+00> : vector<2048x128xf32>
    %94 = tpu.matmul %93, %92, %cst_23 {dimension_numbers = #tpu.dot_dimension_numbers<[0], [0], [1], [1], [0, 1, 1, 1], [], []>} : vector<16x2048xbf16>, vector<16x128xbf16>, vector<2048x128xf32> -> vector<2048x128xf32>
    %cst_24 = arith.constant 0.000000e+00 : f32
    %95 = vector.broadcast %cst_24 : f32 to vector<2048x128xf32>
    %96 = arith.maximumf %94, %95 : vector<2048x128xf32>
    %97 = arith.truncf %96 : vector<2048x128xf32> to vector<2048x128xbf16>
    %c0_25 = arith.constant 0 : index
    %c0_26 = arith.constant 0 : index
    %98 = vector.load %arg5[%c0_25, %c0_26] : memref<16x2048xbf16, #tpu.memory_space<vmem>>, vector<16x2048xbf16>
    %cst_27 = arith.constant dense<0.000000e+00> : vector<16x128xf32>
    %99 = tpu.matmul %98, %97, %cst_27 {dimension_numbers = #tpu.dot_dimension_numbers<[1], [0], [0], [1], [0, 0, 1, 1], [], []>} : vector<16x2048xbf16>, vector<2048x128xbf16>, vector<16x128xf32> -> vector<16x128xf32>
    %100 = vector.extract_strided_slice %99 {offsets = [0, 0], sizes = [8, 128], strides = [1, 1]} : vector<16x128xf32> to vector<8x128xf32>
    %101 = vector.broadcast %15 : vector<8x1xf32> to vector<8x128xf32>
    %102 = arith.addf %100, %101 : vector<8x128xf32>
    %103 = arith.addf %85, %102 : vector<8x128xf32>
    %cst_28 = arith.constant dense<0.000000e+00> : vector<128xf32>
    %104 = vector.multi_reduction <add>, %103, %cst_28 [0] : vector<8x128xf32> to vector<128xf32>
    %105 = vector.shape_cast %104 : vector<128xf32> to vector<1x128xf32>
    %cst_29 = arith.constant 8.000000e+00 : f32
    %106 = vector.broadcast %cst_29 : f32 to vector<1x128xf32>
    %107 = arith.divf %105, %106 : vector<1x128xf32>
    %108 = vector.broadcast %107 : vector<1x128xf32> to vector<8x128xf32>
    %109 = arith.subf %103, %108 : vector<8x128xf32>
    %110 = arith.mulf %109, %109 : vector<8x128xf32>
    %cst_30 = arith.constant dense<0.000000e+00> : vector<128xf32>
    %111 = vector.multi_reduction <add>, %110, %cst_30 [0] : vector<8x128xf32> to vector<128xf32>
    %112 = vector.shape_cast %111 : vector<128xf32> to vector<1x128xf32>
    %cst_31 = arith.constant 8.000000e+00 : f32
    %113 = vector.broadcast %cst_31 : f32 to vector<1x128xf32>
    %114 = arith.divf %112, %113 : vector<1x128xf32>
    %115 = vector.broadcast %107 : vector<1x128xf32> to vector<8x128xf32>
    %116 = arith.subf %103, %115 : vector<8x128xf32>
    %cst_32 = arith.constant 9.99999974E-6 : f32
    %117 = vector.broadcast %cst_32 : f32 to vector<1x128xf32>
    %118 = arith.addf %114, %117 : vector<1x128xf32>
    %119 = math.rsqrt %118 : vector<1x128xf32>
    %120 = vector.broadcast %119 : vector<1x128xf32> to vector<8x128xf32>
    %121 = arith.mulf %116, %120 : vector<8x128xf32>
    %122 = vector.broadcast %18 : vector<8x1xf32> to vector<8x128xf32>
    %123 = arith.mulf %121, %122 : vector<8x128xf32>
    %124 = vector.broadcast %19 : vector<8x1xf32> to vector<8x128xf32>
    %125 = arith.addf %123, %124 : vector<8x128xf32>
    %126 = vector.broadcast %20 : vector<8x1xf32> to vector<8x128xf32>
    %127 = arith.mulf %126, %125 : vector<8x128xf32>
    %cst_33 = arith.constant dense<0.000000e+00> : vector<128xf32>
    %128 = vector.multi_reduction <add>, %127, %cst_33 [0] : vector<8x128xf32> to vector<128xf32>
    %129 = vector.shape_cast %128 : vector<128xf32> to vector<1x128xf32>
    %130 = vector.broadcast %21 : vector<1x1xf32> to vector<1x128xf32>
    %131 = arith.addf %129, %130 : vector<1x128xf32>
    %c0_34 = arith.constant 0 : index
    %c0_35 = arith.constant 0 : index
    %c0_36 = arith.constant 0 : index
    %132 = vector.load %arg6[%c0_34, %c0_35, %c0_36] : memref<1x1x128xf32, #tpu.memory_space<vmem>>, vector<1x1x128xf32>
    %133 = vector.shape_cast %132 : vector<1x1x128xf32> to vector<1x128xf32>
    %134 = vector.shape_cast %131 : vector<1x128xf32> to vector<1x1x128xf32>
    tpu.vector_store %arg6[%c0_34, %c0_35, %c0_36], %134 {strides = array<i32>} : memref<1x1x128xf32, #tpu.memory_space<vmem>>, vector<1x1x128xf32>,
    return
  }
  func.func @transform_0(%arg0: i32) -> (i32, i32, i32) {
    %c0_i32 = arith.constant 0 : i32
    %c0_i32_0 = arith.constant 0 : i32
    %c0_i32_1 = arith.constant 0 : i32
    return %arg0, %c0_i32, %c0_i32_0 : i32, i32, i32
  }
  func.func @transform_1(%arg0: i32) -> (i32, i32, i32) {
    %c0_i32 = arith.constant 0 : i32
    %c0_i32_0 = arith.constant 0 : i32
    %c0_i32_1 = arith.constant 0 : i32
    return %arg0, %c0_i32, %c0_i32_0 : i32, i32, i32
  }
  func.func @transform_2(%arg0: i32) -> (i32, i32) {
    %c0_i32 = arith.constant 0 : i32
    %c0_i32_0 = arith.constant 0 : i32
    %c0_i32_1 = arith.constant 0 : i32
    return %c0_i32, %c0_i32_0 : i32, i32
  }
  func.func @transform_3(%arg0: i32) -> (i32, i32) {
    %c0_i32 = arith.constant 0 : i32
    %c0_i32_0 = arith.constant 0 : i32
    %c0_i32_1 = arith.constant 0 : i32
    return %c0_i32, %c0_i32_0 : i32, i32
  }
  func.func @transform_4(%arg0: i32) -> (i32, i32) {
    %c0_i32 = arith.constant 0 : i32
    %c0_i32_0 = arith.constant 0 : i32
    %c0_i32_1 = arith.constant 0 : i32
    return %c0_i32, %c0_i32_0 : i32, i32
  }
  func.func @transform_5(%arg0: i32) -> (i32, i32, i32) {
    %c0_i32 = arith.constant 0 : i32
    %c0_i32_0 = arith.constant 0 : i32
    %c0_i32_1 = arith.constant 0 : i32
    return %arg0, %c0_i32, %c0_i32_0 : i32, i32, i32
  }
}

</mosaic_0001>

<bundles_post_ra>
// kernel: float_sequence_transformer.1
= control target key start
LH: loop header
LB: loop body
LE: loop exit
PB: predicated region body
PF: predicated region fallthrough
CT: control target
= control target key end

     0   :  { %v3801_v0 = vmov 1   ;;  %v3802_v2 = vmov 2   ;;  %v3803_v3 = vmov 4   ;;  %v3804_v4 = vmov 0.0   ;;  %s4547_s2 = inlined_call_operand.vmem [shape: f32[32,128], index: 2, kind: input, shape index: {}]   ;;  %s4548_s0 = inlined_call_operand.vmem [shape: f32[1,8,128], index: 0, kind: input, shape index: {}]   ;;  %s4549_s1 = inlined_call_operand.vmem [shape: f32[1,8,128], index: 1, kind: input, shape index: {}]   ;;  %s4550_s3 = inlined_call_operand.vmem [shape: bf16[16,2048], index: 3, kind: input, shape index: {}]   ;;  %s4551_s4 = inlined_call_operand.vmem [shape: bf16[16,2048], index: 4, kind: input, shape index: {}]   ;;  %s4552_s5 = inlined_call_operand.vmem [shape: f32[1,1,128], index: 5, kind: output, shape index: {}]  }
   0x1   :  { %3778 = vset.pattern.permute.xlu0 %v3801_v0  ;;  %v3852_v1 = vld [vmem:[%s4547_s2 + $0x18] sm:$0xff]  ;;  %3780 = vset.pattern.permute.xlu1 %v3802_v2  ;;  %vm3805_vm0 = vmmov 0   ;;  %v3806_v5 = vmov 3   ;;  %v32_v6 = vlaneseq  ;;  %v3866_v9 = vld [vmem:[%s4548_s0] sm:$0xff]  ;;  %vm54_vm1 = vcmask 64512   ;;  %v24_v47 = vld [vmem:[%s4547_s2 + $0x8] sm:$0xff] }
   0x2   :  { %29 = vperm.xlu0 %3778, %v3852_v1   ;;  %43 = vperm.xlu1 %3780, %v3852_v1   ;;  %v23_v15 = vld [vmem:[%s4547_s2] sm:$0xff]  ;;  %v3807_v48 = vmov 0   ;;  %v3808_v49 = vmov 6   ;;  %v3809_v50 = vmov 5   ;;  %v3810_v51 = vmov 9   ;;  %v359_v53 = vld [vmem:[%s4550_s3 + $0x10] sm:$0xff] }
   0x3   :  { %3485 = vmatprep.subr.mxu0 %v3804_v4  ;;  %3490 = vmatprep.subr.mxu1 %v3804_v4  ;;  %v3860_v7 = vshrl.u32 %v32_v6, 7  ;;  %v22_v25 = vld [vmem:[%s4549_s1] sm:$0xff]  ;;  %v3811_v52 = vmov 8   ;;  %v367_v54 = vld [vmem:[%s4550_s3 + $0x50] sm:$0xff]  ;;  %vm709_vm2 = vcmask 130048   ;;  %vm3812_vm4 = vmmov 1  }
   0x4   :  { %3487 = vmatprep.mubr.msk.f32.mxu0 %vm3805_vm0, %v3804_v4  ;;  %3492 = vmatprep.mubr.msk.f32.mxu1 %vm3805_vm0, %v3804_v4  ;;  %v3016_v55 = vcombine.high %v359_v53, %v367_v54  ;;  %v3015_v56 = vcombine.low %v359_v53, %v367_v54  ;;  %v357_v57 = vld [vmem:[%s4550_s3] sm:$0xff] }
   0x5   :  { %v34_v8 = vsub.s32 7, %v3860_v7  ;;  %v365_v58 = vld [vmem:[%s4550_s3 + $0x40] sm:$0xff]  ;;  %vm353_vm3 = vcmp.eq.s32.totalorder %v3860_v7, 0 }
   0x6   :  { %3779 = vset.pattern.permute.xlu0 %v3803_v3  ;;  %3781 = vset.pattern.permute.xlu1 %v3806_v5  ;;  %v3011_v59 = vcombine.low %v357_v57, %v365_v58  ;;  %v3012_v62 = vcombine.high %v357_v57, %v365_v58  ;;  %vm3027_vm5 = vmpackc.low %vm353_vm3, %vm3812_vm4 }
   0x7   :  { %38 = vperm.xlu0 %3779, %v3852_v1   ;;  %155 = vperm.xlu1 %3781, %v3852_v1   ;;  %v3869_v11 = vrot.slane %v3866_v9, %v34_v8 }
   0xb   :  { %3782 = vset.pattern.permute.xlu1 %v3807_v48  ;;  %3783 = vset.pattern.permute.xlu0 %v3808_v49  ;;  %v362_v49 = vld [vmem:[%s4550_s3 + $0x28] sm:$0xff] }
   0xc   :  { %311 = vperm.xlu1 %3782, %v3852_v1   ;;  %234 = vperm.xlu0 %3783, %v3852_v1  }
  0x10   :  { %3784 = vset.pattern.permute.xlu1 %v3809_v50  ;;  %3786 = vset.pattern.permute.xlu0 %v3810_v51 }
  0x11   :  { %316 = vperm.xlu1 %3784, %v3852_v1   ;;  %347 = vperm.xlu0 %3786, %v3852_v1  }
  0x15   :  { %3785 = vset.pattern.permute.xlu1 %v3811_v52 }
  0x16   :  { %342 = vperm.xlu1 %3785, %v3852_v1  }
  0x2f   :  { %533 = vxpose.xlu0.c.b16.start.end [1/1] (short) %v3016_v55, 128 }
  0x39   :  { %517 = vxpose.xlu1.c.b16.start.end [1/1] (short) %v3015_v56, 128 }
  0x56   :  { %453 = vxpose.xlu1.c.b16.start.end [1/1] (short) %v3011_v59, 128 }
  0x73   :  { %469 = vxpose.xlu1.c.b16.start.end [1/1] (short) %v3012_v62, 128 }
  0x81   :  { %v30_v10 = vpop.permute.xlu0 %29  ;;  %v44_v16 = vpop.permute.xlu1 %43 }
  0x82   :  { %v36_v12 = vmul.f32 %v3869_v11, %v30_v10 }
  0x86   :  { %v39_v13 = vpop.permute.xlu0 %38 }
  0x87   :  { %v41_v14 = vadd.f32 %v39_v13, %v36_v12  ;;  %v25_v12 = vld [vmem:[%s4547_s2 + $0x10] sm:$0xff]  ;;  %v368_v13 = vld [vmem:[%s4550_s3 + $0x58] sm:$0xff] }
  0x89   :  { %3486 = vmatpush3.msra.mxu0 %v41_v14  ;;  %v46_v17 = vmul.f32 %v44_v16, %v41_v14 }
  0x8a   :  { %3488 = vmatmul.mubr.msk.f32.vlgmr.msra.gmra.mrb[0].mxu0 %vm54_vm1, %v23_v15  ;;  %3495 = vmatprep.subr.mxu0 %v3804_v4 }
  0x8b   :  { %3497 = vmatprep.mubr.msk.f32.mxu0 %vm3805_vm0, %v3804_v4  ;;  %v47_v18 = vrot.slane %v46_v17, 4  ;;  %v156_v4 = vpop.permute.xlu1 %155 }
  0x8d   :  { %v48_v19 = vadd.f32 %v47_v18, %v46_v17  ;;  %v358_v17 = vld [vmem:[%s4550_s3 + $0x8] sm:$0xff] }
  0x8e   :  { %v366_v18 = vld [vmem:[%s4550_s3 + $0x48] sm:$0xff] }
  0x8f   :  { %v49_v20 = vrot.slane %v48_v19, 2  ;;  %v312_v14 = vpop.permute.xlu1 %311 }
  0x91   :  { %v50_v21 = vadd.f32 %v49_v20, %v48_v19  ;;  %v3013_v19 = vcombine.low %v358_v17, %v366_v18 }
  0x93   :  { %v51_v22 = vrot.slane %v50_v21, 1  ;;  %v317_v16 = vpop.permute.xlu1 %316  ;;  %485 = vxpose.xlu1.c.b16.start.end [1/1] (short) %v3013_v19, 128 }
  0x95   :  { %v52_v23 = vadd.f32 %v51_v22, %v50_v21 }
  0x97   :  { %v53_v24 = vmul.f32 %v52_v23, %v3866_v9  ;;  %v3919_v20 = vpop.permute.xlu1 %342 }
  0x9f   :  { %v3921_v21 = vpop.trf.xlu1 }
  0xa3   :  { %v3923_v22 = vpop.trf.xlu1 }
  0xa7   :  { %v527_v23 = vpop.trf.xlu1 }
 0x15d   :  { %v124_v26 = vpop.f32.mrb[0].mxu0 }
 0x15e   :  { %v128_v27 = vadd.f32 %v124_v26, %v53_v24  ;;  %v3489_v28 = vpop.f32.mrb[1].mxu0  ;;  %v3925_v24 = vpop.trf.xlu1 }
 0x160   :  { %v129_v29 = vadd.f32 %v128_v27, %v22_v25 }
 0x162   :  { %v130_v30 = vrot.slane %v129_v29, 4  ;;  %v3927_v25 = vpop.trf.xlu1 }
 0x164   :  { %v131_v31 = vmax.f32 %v129_v29, %v130_v30 }
 0x166   :  { %v132_v32 = vrot.slane %v131_v31, 2  ;;  %v3929_v27 = vpop.trf.xlu1 }
 0x168   :  { %v133_v33 = vmax.f32 %v131_v31, %v132_v32  ;;  %v361_v32 = vld [vmem:[%s4550_s3 + $0x20] sm:$0xff] }
 0x16a   :  { %v134_v34 = vrot.slane %v133_v33, 1  ;;  %v3931_v28 = vpop.trf.xlu1 }
 0x16c   :  { %v135_v35 = vmax.f32 %v133_v33, %v134_v34  ;;  %v369_v33 = vld [vmem:[%s4550_s3 + $0x60] sm:$0xff] }
 0x16d   :  { %v3019_v34 = vcombine.low %v361_v32, %v369_v33 }
 0x16e   :  { %v136_v36 = vsub.f32 %v129_v29, %v135_v35  ;;  %v3014_v29 = vcombine.high %v358_v17, %v366_v18  ;;  %v3934_v30 = vpop.trf.xlu1  ;;  %v3020_v35 = vcombine.high %v361_v32, %v369_v33 }
 0x170   :  { %v137_v37 = vmul.f32 1.442695, %v136_v36  ;;  %501 = vxpose.xlu1.c.b16.start.end [1/1] (short) %v3014_v29, 128  ;;  %v235_v36 = vpop.permute.xlu0 %234 }
 0x172   :  { %3792 = vpow2.f32 %v137_v37  ;;  %v461_v31 = vpop.trf.xlu1 }
 0x174   :  { %v348_v37 = vpop.permute.xlu0 %347 }
 0x17c   :  { %v3793_v38 = vpop.eup %3792 }
 0x17d   :  { %v139_v39 = vrot.slane %v3793_v38, 4 }
 0x17f   :  { %v140_v40 = vadd.f32 %v3793_v38, %v139_v39  ;;  %v3944_v39 = vpop.trf.xlu1 }
 0x181   :  { %v141_v41 = vrot.slane %v140_v40, 2 }
 0x183   :  { %v142_v42 = vadd.f32 %v141_v41, %v140_v40  ;;  %v3946_v41 = vpop.trf.xlu0 }
 0x185   :  { %v143_v43 = vrot.slane %v142_v42, 1 }
 0x187   :  { %v144_v44 = vadd.f32 %v143_v43, %v142_v42  ;;  %v3948_v48 = vpop.trf.xlu0 }
 0x189   :  { %3794 = vrcp.f32 %v144_v44 }
 0x18b   :  { %v3956_v55 = vpop.trf.xlu0 }
 0x193   :  { %v3795_v45 = vpop.eup %3794 }
 0x194   :  { %v146_v46 = vmul.f32 %v3795_v45, %v3793_v38  ;;  %v314_v38 = vmul.f32 %v312_v14, %v3869_v11  ;;  %v370_v11 = vld [vmem:[%s4550_s3 + $0x68] sm:$0xff] }
 0x195   :  { %v3021_v51 = vcombine.low %v362_v49, %v370_v11 }
 0x196   :  { %3491 = vmatpush3.msra.mxu1 %v146_v46  ;;  %v147_v60 = vmul.f32 %v146_v46, %v3866_v9  ;;  %v360_v9 = vld [vmem:[%s4550_s3 + $0x18] sm:$0xff]  ;;  %v319_v42 = vadd.f32 %v317_v16, %v314_v38 }
 0x197   :  { %3493 = vmatmul.mubr.msk.f32.vlgmr.msra.gmra.mrb[0].mxu1 %vm54_vm1, %v24_v47  ;;  %v3017_v15 = vcombine.low %v360_v9, %v368_v13  ;;  %v3018_v26 = vcombine.high %v360_v9, %v368_v13  ;;  %v463_v47 = vpop.trf.xlu1  ;;  %613 = vxpose.xlu1.c.b16.start.end [1/1] (short) %v3021_v51, 128 }
 0x198   :  { %v148_v61 = vrot.slane %v147_v60, 4  ;;  %3570 = vmatprep.mubr.msk.bf16.mxu1 %vm709_vm2, %v527_v23 }
 0x199   :  { %549 = vxpose.xlu0.c.b16.start.end [1/1] (short) %v3017_v15, 128  ;;  %v3022_v15 = vcombine.high %v362_v49, %v370_v11 }
 0x19a   :  { %v149_v63 = vadd.f32 %v148_v61, %v147_v60  ;;  %v3958_v60 = vpop.trf.xlu0 }
 0x19b   :  { %v464_v54 = vpop.trf.xlu1 }
 0x19c   :  { %v150_v0 = vrot.slane %v149_v63, 2 }
 0x19e   :  { %v151_v1 = vadd.f32 %v150_v0, %v149_v63 }
 0x19f   :  { %v465_v59 = vpop.trf.xlu1 }
 0x1a0   :  { %v152_v2 = vrot.slane %v151_v1, 1 }
 0x1a2   :  { %v153_v3 = vadd.f32 %v152_v2, %v151_v1  ;;  %v3960_v1 = vpop.trf.xlu0 }
 0x1a3   :  { %v466_v0 = vpop.trf.xlu1 }
 0x1a4   :  { %v158_v5 = vmul.f32 %v156_v4, %v153_v3 }
 0x1b6   :  { %565 = vxpose.xlu0.c.b16.start.end [1/1] (short) %v3018_v26, 128 }
 0x1d3   :  { %581 = vxpose.xlu0.c.b16.start.end [1/1] (short) %v3019_v34, 128  ;;  %v3813_v34 = vmov 1.0  }
 0x1f0   :  { %597 = vxpose.xlu0.c.b16.start.end [1/1] (short) %v3020_v35, 128 }
 0x20d   :  { %629 = vxpose.xlu0.c.b16.start.end [1/1] (short) %v3022_v15, 128 }
 0x26a   :  { %v228_v6 = vpop.f32.mrb[0].mxu1 }
 0x26b   :  { %v232_v8 = vadd.f32 %v228_v6, %v158_v5  ;;  %v3494_v10 = vpop.f32.mrb[1].mxu1  ;;  %v467_v5 = vpop.trf.xlu1 }
 0x26c   :  { %v3962_v6 = vpop.trf.xlu0 }
 0x26d   :  { %3496 = vmatpush3.msra.mxu0 %v232_v8 }
 0x26e   :  { %3498 = vmatmul.mubr.msk.f32.vlgmr.msra.gmra.mrb[2].mxu0 %vm54_vm1, %v25_v12 }
 0x26f   :  { %3502 = vmatprep.mubr.msk.bf16.mxu0 %vm709_vm2, %v461_v31  ;;  %v468_v9 = vpop.trf.xlu1 }
 0x270   :  { %v3964_v13 = vpop.trf.xlu0 }
 0x273   :  { %v477_v16 = vpop.trf.xlu1 }
 0x274   :  { %v3966_v17 = vpop.trf.xlu0 }
 0x277   :  { %v478_v18 = vpop.trf.xlu1 }
 0x278   :  { %v3968_v19 = vpop.trf.xlu0 }
 0x27b   :  { %v479_v31 = vpop.trf.xlu1 }
 0x27c   :  { %v3974_v33 = vpop.trf.xlu0 }
 0x280   :  { %v559_v38 = vpop.trf.xlu0 }
 0x341   :  { %v306_v40 = vpop.f32.mrb[2].mxu0 }
 0x342   :  { %v307_v43 = vadd.f32 %v306_v40, %v235_v36  ;;  %v3499_v44 = vpop.f32.mrb[3].mxu0  ;;  %v480_v36 = vpop.trf.xlu1 }
 0x344   :  { %v320_v45 = vadd.f32 %v319_v42, %v307_v43 }
 0x346   :  { %v321_v46 = vrot.slane %v320_v45, 4  ;;  %v481_v7 = vpop.trf.xlu1 }
 0x348   :  { %v322_v50 = vadd.f32 %v321_v46, %v320_v45 }
 0x34a   :  { %v323_v52 = vrot.slane %v322_v50, 2 }
 0x34c   :  { %v324_v53 = vadd.f32 %v323_v52, %v322_v50 }
 0x34e   :  { %v325_v56 = vrot.slane %v324_v53, 1 }
 0x350   :  { %v326_v57 = vadd.f32 %v325_v56, %v324_v53 }
 0x352   :  { %v328_v58 = vmul.f32 0.125, %v326_v57 }
 0x354   :  { %v329_v61 = vsub.f32 %v320_v45, %v328_v58  ;;  %v364_v58 = vld [vmem:[%s4550_s3 + $0x38] sm:$0xff] }
 0x356   :  { %v330_v62 = vmul.f32 %v329_v61, %v329_v61 }
 0x358   :  { %v331_v63 = vrot.slane %v330_v62, 4 }
 0x35a   :  { %v332_v2 = vadd.f32 %v331_v63, %v330_v62 }
 0x35c   :  { %v333_v3 = vrot.slane %v332_v2, 2 }
 0x35e   :  { %v334_v4 = vadd.f32 %v333_v3, %v332_v2 }
 0x360   :  { %v335_v8 = vrot.slane %v334_v4, 1 }
 0x362   :  { %v336_v10 = vadd.f32 %v335_v8, %v334_v4 }
 0x364   :  { %v337_v12 = vmul.f32 0.125, %v336_v10 }
 0x366   :  { %v338_v14 = vadd.f32 1e-05, %v337_v12 }
 0x368   :  { %3796 = vrsqrt.f32 %v338_v14 }
 0x372   :  { %v3797_v23 = vpop.eup %3796 }
 0x373   :  { %v340_v26 = vmul.f32 %v3797_v23, %v329_v61 }
 0x375   :  { %v345_v29 = vmul.f32 %v3919_v20, %v340_v26  ;;  %v560_v20 = vpop.trf.xlu0 }
 0x377   :  { %v3972_v32 = vadd.f32 %v348_v37, %v345_v29  ;;  %v363_v37 = vld [vmem:[%s4550_s3 + $0x30] sm:$0xff] }
 0x379   :  { %v3028_v35 = vpack.c.bf16 %v3813_v34, %v3972_v32  ;;  %v561_v40 = vpop.trf.xlu0 }
 0x37b   :  { %3500 = vmatprep.subr.msk.bf16.mxu0 %vm3027_vm5, %v3028_v35  ;;  %3758 = vmatprep.subr.msk.bf16.mxu1 %vm3027_vm5, %v3028_v35 }
 0x37c   :  { %3501 = vmatpush3.bf16.msk.msra.mxu0 %vm3027_vm5, %v3028_v35  ;;  %3759 = vmatpush3.bf16.msk.msra.mxu1 %vm3027_vm5, %v3028_v35 }
 0x37f   :  { %3503 = vmatmul.mubr.msk.bf16.vlgmr.msra.gmra.mrb[4].mxu0 %vm709_vm2, %v3944_v39  ;;  %3571 = vmatmul.mubr.msk.bf16.vlgmr.msra.gmra.mrb[4].mxu1 %vm709_vm2, %v3925_v24  ;;  %v371_v24 = vld [vmem:[%s4550_s3 + $0x70] sm:$0xff] }
 0x380   :  { %3574 = vmatprep.mubr.msk.bf16.mxu1 %vm709_vm2, %v3927_v25  ;;  %3506 = vmatprep.mubr.msk.bf16.mxu0 %vm709_vm2, %v463_v47  ;;  %v482_v25 = vpop.trf.xlu1  ;;  %v3023_v39 = vcombine.low %v363_v37, %v371_v24 }
 0x382   :  { %645 = vxpose.xlu1.c.b16.start.end [1/1] (short) %v3023_v39, 128 }
 0x384   :  { %v483_v42 = vpop.trf.xlu1 }
 0x387   :  { %3507 = vmatmul.mubr.msk.bf16.gmra.mrb[8].mxu0 %vm709_vm2, %v464_v54  ;;  %3575 = vmatmul.mubr.msk.bf16.gmra.mrb[8].mxu1 %vm709_vm2, %v3929_v27  ;;  %v562_v27 = vpop.trf.xlu0 }
 0x388   :  { %3578 = vmatprep.mubr.msk.bf16.mxu1 %vm709_vm2, %v3931_v28  ;;  %3510 = vmatprep.mubr.msk.bf16.mxu0 %vm709_vm2, %v465_v59  ;;  %v484_v43 = vpop.trf.xlu1  ;;  %v372_v59 = vld [vmem:[%s4550_s3 + $0x78] sm:$0xff] }
 0x389   :  { %v3026_v12 = vcombine.high %v364_v58, %v372_v59 }
 0x38b   :  { %v563_v28 = vpop.trf.xlu0 }
 0x38c   :  { %v493_v44 = vpop.trf.xlu1 }
 0x38f   :  { %3511 = vmatmul.mubr.msk.bf16.gmra.mrb[12].mxu0 %vm709_vm2, %v466_v0  ;;  %3579 = vmatmul.mubr.msk.bf16.gmra.mrb[12].mxu1 %vm709_vm2, %v3934_v30  ;;  %v564_v30 = vpop.trf.xlu0 }
 0x390   :  { %3514 = vmatprep.mubr.msk.bf16.mxu0 %vm709_vm2, %v467_v5  ;;  %3582 = vmatprep.mubr.msk.bf16.mxu1 %vm709_vm2, %v3946_v41  ;;  %v494_v41 = vpop.trf.xlu1 }
 0x393   :  { %v573_v45 = vpop.trf.xlu0 }
 0x394   :  { %v495_v46 = vpop.trf.xlu1 }
 0x397   :  { %3515 = vmatmul.mubr.msk.bf16.gmra.mrb[16].mxu0 %vm709_vm2, %v468_v9  ;;  %3583 = vmatmul.mubr.msk.bf16.gmra.mrb[16].mxu1 %vm709_vm2, %v3948_v48  ;;  %v574_v47 = vpop.trf.xlu0  ;;  %v3024_v48 = vcombine.high %v363_v37, %v371_v24 }
 0x398   :  { %3518 = vmatprep.mubr.msk.bf16.mxu0 %vm709_vm2, %v477_v16  ;;  %3586 = vmatprep.mubr.msk.bf16.mxu1 %vm709_vm2, %v3956_v55  ;;  %v496_v49 = vpop.trf.xlu1 }
 0x399   :  { %661 = vxpose.xlu0.c.b16.start.end [1/1] (short) %v3024_v48, 128 }
 0x39b   :  { %v575_v11 = vpop.trf.xlu0 }
 0x39c   :  { %v497_v50 = vpop.trf.xlu1 }
 0x39f   :  { %3519 = vmatmul.mubr.msk.bf16.gmra.mrb[20].mxu0 %vm709_vm2, %v478_v18  ;;  %3587 = vmatmul.mubr.msk.bf16.gmra.mrb[20].mxu1 %vm709_vm2, %v3958_v60  ;;  %v576_v51 = vpop.trf.xlu0  ;;  %v3025_v60 = vcombine.low %v364_v58, %v372_v59 }
 0x3a0   :  { %3522 = vmatprep.mubr.msk.bf16.mxu0 %vm709_vm2, %v479_v31  ;;  %3590 = vmatprep.mubr.msk.bf16.mxu1 %vm709_vm2, %v3960_v1  ;;  %v498_v52 = vpop.trf.xlu1 }
 0x3a1   :  { %677 = vxpose.xlu1.c.b16.start.end [1/1] (short) %v3025_v60, 128 }
 0x3a3   :  { %v577_v53 = vpop.trf.xlu0 }
 0x3a4   :  { %v499_v54 = vpop.trf.xlu1 }
 0x3a7   :  { %3523 = vmatmul.mubr.msk.bf16.gmra.mrb[24].mxu0 %vm709_vm2, %v480_v36  ;;  %3591 = vmatmul.mubr.msk.bf16.gmra.mrb[24].mxu1 %vm709_vm2, %v3962_v6  ;;  %v578_v55 = vpop.trf.xlu0  ;;  %v4090_v36 = vld [vmem:[%s4551_s4] sm:$0xff] }
 0x3a8   :  { %3526 = vmatprep.mubr.msk.bf16.mxu0 %vm709_vm2, %v481_v7  ;;  %3594 = vmatprep.mubr.msk.bf16.mxu1 %vm709_vm2, %v3964_v13  ;;  %v500_v56 = vpop.trf.xlu1 }
 0x3ab   :  { %v579_v57 = vpop.trf.xlu0 }
 0x3ac   :  { %v509_v61 = vpop.trf.xlu1 }
 0x3af   :  { %3527 = vmatmul.mubr.msk.bf16.gmra.mrb[28].mxu0 %vm709_vm2, %v482_v25  ;;  %3595 = vmatmul.mubr.msk.bf16.gmra.mrb[28].mxu1 %vm709_vm2, %v3966_v17  ;;  %v580_v62 = vpop.trf.xlu0 }
 0x3b0   :  { %3530 = vmatprep.mubr.msk.bf16.mxu0 %vm709_vm2, %v483_v42  ;;  %3598 = vmatprep.mubr.msk.bf16.mxu1 %vm709_vm2, %v3968_v19  ;;  %v510_v63 = vpop.trf.xlu1 }
 0x3b3   :  { %v589_v0 = vpop.trf.xlu0 }
 0x3b4   :  { %v511_v1 = vpop.trf.xlu1 }
 0x3b6   :  { %693 = vxpose.xlu0.c.b16.start.end [1/1] (short) %v3026_v12, 128 }
 0x3b7   :  { %3531 = vmatmul.mubr.msk.bf16.gmra.mrb[32].mxu0 %vm709_vm2, %v484_v43  ;;  %3599 = vmatmul.mubr.msk.bf16.gmra.mrb[32].mxu1 %vm709_vm2, %v3974_v33  ;;  %v590_v2 = vpop.trf.xlu0 }
 0x3b8   :  { %3534 = vmatprep.mubr.msk.bf16.mxu0 %vm709_vm2, %v493_v44  ;;  %3602 = vmatprep.mubr.msk.bf16.mxu1 %vm709_vm2, %v559_v38  ;;  %v512_v3 = vpop.trf.xlu1  ;;  %v4095_v38 = vld [vmem:[%s4551_s4 + $0x40] sm:$0xff] }
 0x3b9   :  { %v3159_v7 = vcombine.high %v4090_v36, %v4095_v38  ;;  %v3158_v24 = vcombine.low %v4090_v36, %v4095_v38 }
 0x3bb   :  { %v591_v4 = vpop.trf.xlu0 }
 0x3bc   :  { %v513_v5 = vpop.trf.xlu1 }
 0x3bf   :  { %3535 = vmatmul.mubr.msk.bf16.gmra.mrb[36].mxu0 %vm709_vm2, %v494_v41  ;;  %3603 = vmatmul.mubr.msk.bf16.gmra.mrb[36].mxu1 %vm709_vm2, %v560_v20  ;;  %v592_v6 = vpop.trf.xlu0 }
 0x3c0   :  { %3538 = vmatprep.mubr.msk.bf16.mxu0 %vm709_vm2, %v495_v46  ;;  %3606 = vmatprep.mubr.msk.bf16.mxu1 %vm709_vm2, %v561_v40  ;;  %v514_v8 = vpop.trf.xlu1 }
 0x3c3   :  { %v593_v10 = vpop.trf.xlu0 }
 0x3c4   :  { %v515_v9 = vpop.trf.xlu1 }
 0x3c7   :  { %3539 = vmatmul.mubr.msk.bf16.gmra.mrb[40].mxu0 %vm709_vm2, %v496_v49  ;;  %3607 = vmatmul.mubr.msk.bf16.gmra.mrb[40].mxu1 %vm709_vm2, %v562_v27  ;;  %v594_v13 = vpop.trf.xlu0 }
 0x3c8   :  { %3542 = vmatprep.mubr.msk.bf16.mxu0 %vm709_vm2, %v497_v50  ;;  %3610 = vmatprep.mubr.msk.bf16.mxu1 %vm709_vm2, %v563_v28  ;;  %v516_v14 = vpop.trf.xlu1 }
 0x3cb   :  { %v595_v15 = vpop.trf.xlu0 }
 0x3cc   :  { %v621_v26 = vpop.trf.xlu1 }
 0x3cf   :  { %3543 = vmatmul.mubr.msk.bf16.gmra.mrb[44].mxu0 %vm709_vm2, %v498_v52  ;;  %3611 = vmatmul.mubr.msk.bf16.gmra.mrb[44].mxu1 %vm709_vm2, %v564_v30  ;;  %v596_v16 = vpop.trf.xlu0 }
 0x3d0   :  { %3546 = vmatprep.mubr.msk.bf16.mxu0 %vm709_vm2, %v499_v54  ;;  %3614 = vmatprep.mubr.msk.bf16.mxu1 %vm709_vm2, %v573_v45  ;;  %v622_v31 = vpop.trf.xlu1 }
 0x3d3   :  { %v605_v17 = vpop.trf.xlu0 }
 0x3d4   :  { %v623_v34 = vpop.trf.xlu1 }
 0x3d7   :  { %3547 = vmatmul.mubr.msk.bf16.gmra.mrb[48].mxu0 %vm709_vm2, %v500_v56  ;;  %3615 = vmatmul.mubr.msk.bf16.gmra.mrb[48].mxu1 %vm709_vm2, %v574_v47  ;;  %v606_v18 = vpop.trf.xlu0 }
 0x3d8   :  { %3550 = vmatprep.mubr.msk.bf16.mxu0 %vm709_vm2, %v509_v61  ;;  %3618 = vmatprep.mubr.msk.bf16.mxu1 %vm709_vm2, %v575_v11  ;;  %v624_v35 = vpop.trf.xlu1 }
 0x3db   :  { %v607_v19 = vpop.trf.xlu0 }
 0x3dc   :  { %v625_v20 = vpop.trf.xlu1 }
 0x3df   :  { %3551 = vmatmul.mubr.msk.bf16.gmra.mrb[52].mxu0 %vm709_vm2, %v510_v63  ;;  %3619 = vmatmul.mubr.msk.bf16.gmra.mrb[52].mxu1 %vm709_vm2, %v576_v51 }
 0x3e0   :  { %3554 = vmatprep.mubr.msk.bf16.mxu0 %vm709_vm2, %v511_v1  ;;  %3622 = vmatprep.mubr.msk.bf16.mxu1 %vm709_vm2, %v577_v53  ;;  %v626_v25 = vpop.trf.xlu1 }
 0x3e4   :  { %v627_v40 = vpop.trf.xlu1 }
 0x3e7   :  { %3555 = vmatmul.mubr.msk.bf16.gmra.mrb[56].mxu0 %vm709_vm2, %v512_v3  ;;  %3623 = vmatmul.mubr.msk.bf16.gmra.mrb[56].mxu1 %vm709_vm2, %v578_v55 }
 0x3e8   :  { %3558 = vmatprep.mubr.msk.bf16.mxu0 %vm709_vm2, %v513_v5  ;;  %3626 = vmatprep.mubr.msk.bf16.mxu1 %vm709_vm2, %v579_v57  ;;  %v628_v43 = vpop.trf.xlu1 }
 0x3ec   :  { %v4108_v44 = vpop.trf.xlu1 }
 0x3ef   :  { %3559 = vmatmul.mubr.msk.bf16.gmra.mrb[60].mxu0 %vm709_vm2, %v514_v8  ;;  %3627 = vmatmul.mubr.msk.bf16.gmra.mrb[60].mxu1 %vm709_vm2, %v580_v62 }
 0x3f0   :  { %3562 = vmatprep.mubr.msk.bf16.mxu0 %vm709_vm2, %v515_v9  ;;  %3630 = vmatprep.mubr.msk.bf16.mxu1 %vm709_vm2, %v589_v0  ;;  %v4120_v63 = vpop.trf.xlu1 }
 0x3f7   :  { %3563 = vmatmul.mubr.msk.bf16.gmra.mrb[64].mxu0 %vm709_vm2, %v516_v14  ;;  %3631 = vmatmul.mubr.msk.bf16.gmra.mrb[64].mxu1 %vm709_vm2, %v590_v2 }
 0x3f8   :  { %3566 = vmatprep.mubr.msk.bf16.mxu0 %vm709_vm2, %v3921_v21  ;;  %3634 = vmatprep.mubr.msk.bf16.mxu1 %vm709_vm2, %v591_v4  ;;  %v608_v21 = vpop.trf.xlu0 }
 0x3ff   :  { %3567 = vmatmul.mubr.msk.bf16.gmra.mrb[68].mxu0 %vm709_vm2, %v3923_v22  ;;  %3635 = vmatmul.mubr.msk.bf16.gmra.mrb[68].mxu1 %vm709_vm2, %v592_v6  ;;  %v609_v22 = vpop.trf.xlu0 }
 0x400   :  { %3638 = vmatprep.mubr.msk.bf16.mxu1 %vm709_vm2, %v593_v10  ;;  %2663 = vmatprep.mubr.bf16.mxu0 %v3159_v7 }
 0x403   :  { %v610_v23 = vpop.trf.xlu0 }
 0x407   :  { %3639 = vmatmul.mubr.msk.bf16.gmra.mrb[72].mxu1 %vm709_vm2, %v594_v13  ;;  %v611_v29 = vpop.trf.xlu0 }
 0x408   :  { %3642 = vmatprep.mubr.msk.bf16.mxu1 %vm709_vm2, %v595_v15 }
 0x40b   :  { %v612_v33 = vpop.trf.xlu0 }
 0x40f   :  { %3643 = vmatmul.mubr.msk.bf16.gmra.mrb[76].mxu1 %vm709_vm2, %v596_v16  ;;  %v637_v37 = vpop.trf.xlu0 }
 0x410   :  { %3646 = vmatprep.mubr.msk.bf16.mxu1 %vm709_vm2, %v605_v17 }
 0x413   :  { %v638_v39 = vpop.trf.xlu0 }
 0x417   :  { %3647 = vmatmul.mubr.msk.bf16.gmra.mrb[80].mxu1 %vm709_vm2, %v606_v18  ;;  %v639_v42 = vpop.trf.xlu0 }
 0x418   :  { %3650 = vmatprep.mubr.msk.bf16.mxu1 %vm709_vm2, %v607_v19 }
 0x41b   :  { %v640_v27 = vpop.trf.xlu0 }
 0x41f   :  { %3651 = vmatmul.mubr.msk.bf16.gmra.mrb[84].mxu1 %vm709_vm2, %v608_v21  ;;  %v641_v28 = vpop.trf.xlu0 }
 0x420   :  { %3654 = vmatprep.mubr.msk.bf16.mxu1 %vm709_vm2, %v609_v22 }
 0x423   :  { %v642_v62 = vpop.trf.xlu0 }
 0x427   :  { %3655 = vmatmul.mubr.msk.bf16.gmra.mrb[88].mxu1 %vm709_vm2, %v610_v23  ;;  %v643_v23 = vpop.trf.xlu0 }
 0x428   :  { %3658 = vmatprep.mubr.msk.bf16.mxu1 %vm709_vm2, %v611_v29 }
 0x42f   :  { %3659 = vmatmul.mubr.msk.bf16.gmra.mrb[92].mxu1 %vm709_vm2, %v612_v33 }
 0x430   :  { %3662 = vmatprep.mubr.msk.bf16.mxu1 %vm709_vm2, %v621_v26  ;;  %v4132_v26 = vpop.trf.xlu1 }
 0x437   :  { %3663 = vmatmul.mubr.msk.bf16.gmra.mrb[96].mxu1 %vm709_vm2, %v622_v31 }
 0x438   :  { %3666 = vmatprep.mubr.msk.bf16.mxu1 %vm709_vm2, %v623_v34 }
 0x43f   :  { %3667 = vmatmul.mubr.msk.bf16.gmra.mrb[100].mxu1 %vm709_vm2, %v624_v35 }
 0x440   :  { %3670 = vmatprep.mubr.msk.bf16.mxu1 %vm709_vm2, %v625_v20 }
 0x447   :  { %3671 = vmatmul.mubr.msk.bf16.gmra.mrb[104].mxu1 %vm709_vm2, %v626_v25 }
 0x448   :  { %3674 = vmatprep.mubr.msk.bf16.mxu1 %vm709_vm2, %v627_v40 }
 0x44f   :  { %3675 = vmatmul.mubr.msk.bf16.gmra.mrb[108].mxu1 %vm709_vm2, %v628_v43 }
 0x450   :  { %3678 = vmatprep.mubr.msk.bf16.mxu1 %vm709_vm2, %v637_v37 }
 0x452   :  { %v3504_v30 = vpop.f32.mrb[4].mxu0  ;;  %v3572_v41 = vpop.f32.mrb[4].mxu1 }
 0x453   :  { %v2153_v45 = vmax.f32 %v3504_v30, 0.0  ;;  %v1128_v46 = vpop.f32.mrb[5].mxu0  ;;  %v1400_v47 = vpop.f32.mrb[5].mxu1  ;;  %v2221_v50 = vmax.f32 %v3572_v41, 0.0 }
 0x454   :  { %v2151_v48 = vmax.f32 %v1128_v46, 0.0  ;;  %v3505_v49 = vpop.f32.mrb[6].mxu0  ;;  %v3573_v11 = vpop.f32.mrb[6].mxu1  ;;  %v2219_v55 = vmax.f32 %v1400_v47, 0.0 }
 0x455   :  { %v2154_v51 = vmax.f32 %v3505_v49, 0.0  ;;  %v2222_v52 = vmax.f32 %v3573_v11, 0.0  ;;  %v1131_v53 = vpop.f32.mrb[7].mxu0  ;;  %v1403_v54 = vpop.f32.mrb[7].mxu1 }
 0x456   :  { %v2152_v56 = vmax.f32 %v1131_v53, 0.0  ;;  %v2220_v57 = vmax.f32 %v1403_v54, 0.0  ;;  %v4144_v49 = vpop.trf.xlu1 }
 0x457   :  { %v4110_v58 = vpack.c.bf16 %v2154_v51, %v2153_v45  ;;  %v4112_v59 = vpack.c.bf16 %v2222_v52, %v2221_v50  ;;  %3679 = vmatmul.mubr.msk.bf16.gmra.mrb[112].mxu1 %vm709_vm2, %v638_v39 }
 0x458   :  { %v4115_v60 = vpack.c.bf16 %v2152_v56, %v2151_v48  ;;  %v4117_v61 = vpack.c.bf16 %v2220_v57, %v2219_v55  ;;  %3682 = vmatprep.mubr.msk.bf16.mxu1 %vm709_vm2, %v639_v42  ;;  %v644_v48 = vpop.trf.xlu0 }
 0x45a   :  { %v3508_v0 = vpop.f32.mrb[8].mxu0  ;;  %v3576_v1 = vpop.f32.mrb[8].mxu1 }
 0x45b   :  { %v2157_v2 = vmax.f32 %v3508_v0, 0.0  ;;  %v1144_v3 = vpop.f32.mrb[9].mxu0  ;;  %v1416_v4 = vpop.f32.mrb[9].mxu1  ;;  %v2225_v10 = vmax.f32 %v3576_v1, 0.0 }
 0x45c   :  { %v2155_v5 = vmax.f32 %v1144_v3, 0.0  ;;  %v3509_v6 = vpop.f32.mrb[10].mxu0  ;;  %v3577_v8 = vpop.f32.mrb[10].mxu1  ;;  %v2223_v15 = vmax.f32 %v1416_v4, 0.0 }
 0x45d   :  { %v2158_v12 = vmax.f32 %v3509_v6, 0.0  ;;  %v2226_v9 = vmax.f32 %v3577_v8, 0.0  ;;  %v1147_v13 = vpop.f32.mrb[11].mxu0  ;;  %v1419_v14 = vpop.f32.mrb[11].mxu1 }
 0x45e   :  { %v2156_v16 = vmax.f32 %v1147_v13, 0.0  ;;  %v2224_v17 = vmax.f32 %v1419_v14, 0.0  ;;  %v4157_v13 = vpop.trf.xlu0 }
 0x45f   :  { %v4122_v18 = vpack.c.bf16 %v2158_v12, %v2157_v2  ;;  %v4124_v19 = vpack.c.bf16 %v2226_v9, %v2225_v10  ;;  %3683 = vmatmul.mubr.msk.bf16.gmra.mrb[116].mxu1 %vm709_vm2, %v640_v27  ;;  %v657_v9 = vpop.trf.xlu1 }
 0x460   :  { %v4127_v21 = vpack.c.bf16 %v2156_v16, %v2155_v5  ;;  %v4129_v22 = vpack.c.bf16 %v2224_v17, %v2223_v15  ;;  %3686 = vmatprep.mubr.msk.bf16.mxu1 %vm709_vm2, %v641_v28 }
 0x462   :  { %v3512_v29 = vpop.f32.mrb[12].mxu0  ;;  %v3580_v31 = vpop.f32.mrb[12].mxu1 }
 0x463   :  { %v2161_v33 = vmax.f32 %v3512_v29, 0.0  ;;  %v1160_v34 = vpop.f32.mrb[13].mxu0  ;;  %v1432_v35 = vpop.f32.mrb[13].mxu1  ;;  %v2229_v25 = vmax.f32 %v3580_v31, 0.0 }
 0x464   :  { %v2159_v7 = vmax.f32 %v1160_v34, 0.0  ;;  %v3513_v20 = vpop.f32.mrb[14].mxu0  ;;  %v3581_v37 = vpop.f32.mrb[14].mxu1  ;;  %v2227_v43 = vmax.f32 %v1432_v35, 0.0 }
 0x465   :  { %v2162_v39 = vmax.f32 %v3513_v20, 0.0  ;;  %v2230_v40 = vmax.f32 %v3581_v37, 0.0  ;;  %v1163_v42 = vpop.f32.mrb[15].mxu0  ;;  %v1435_v27 = vpop.f32.mrb[15].mxu1 }
 0x466   :  { %v2160_v30 = vmax.f32 %v1163_v42, 0.0  ;;  %v2228_v41 = vmax.f32 %v1435_v27, 0.0 }
 0x467   :  { %v4134_v28 = vpack.c.bf16 %v2162_v39, %v2161_v33  ;;  %v4136_v45 = vpack.c.bf16 %v2230_v40, %v2229_v25  ;;  %3687 = vmatmul.mubr.msk.bf16.gmra.mrb[120].mxu1 %vm709_vm2, %v642_v62 }
 0x468   :  { %v4139_v46 = vpack.c.bf16 %v2160_v30, %v2159_v7  ;;  %v4141_v47 = vpack.c.bf16 %v2228_v41, %v2227_v43  ;;  %3690 = vmatprep.mubr.msk.bf16.mxu1 %vm709_vm2, %v643_v23  ;;  %v658_v30 = vpop.trf.xlu1  ;;  %v4167_v41 = vpop.trf.xlu0 }
 0x46a   :  { %v3516_v11 = vpop.f32.mrb[16].mxu0  ;;  %v3584_v50 = vpop.f32.mrb[16].mxu1 }
 0x46b   :  { %v2165_v51 = vmax.f32 %v3516_v11, 0.0  ;;  %v1176_v52 = vpop.f32.mrb[17].mxu0  ;;  %v1448_v53 = vpop.f32.mrb[17].mxu1  ;;  %v2233_v62 = vmax.f32 %v3584_v50, 0.0 }
 0x46c   :  { %v2163_v54 = vmax.f32 %v1176_v52, 0.0  ;;  %v3517_v55 = vpop.f32.mrb[18].mxu0  ;;  %v3585_v56 = vpop.f32.mrb[18].mxu1  ;;  %v2231_v4 = vmax.f32 %v1448_v53, 0.0 }
 0x46d   :  { %v2166_v57 = vmax.f32 %v3517_v55, 0.0  ;;  %v1179_v0 = vpop.f32.mrb[19].mxu0  ;;  %v2234_v1 = vmax.f32 %v3585_v56, 0.0  ;;  %v1451_v2 = vpop.f32.mrb[19].mxu1 }
 0x46e   :  { %v2164_v3 = vmax.f32 %v1179_v0, 0.0  ;;  %v2232_v5 = vmax.f32 %v1451_v2, 0.0 }
 0x46f   :  { %v4146_v6 = vpack.c.bf16 %v2166_v57, %v2165_v51  ;;  %3691 = vmatmul.mubr.msk.bf16.gmra.mrb[124].mxu1 %vm709_vm2, %v644_v48  ;;  %v4149_v8 = vpack.c.bf16 %v2234_v1, %v2233_v62 }
 0x470   :  { %v4151_v10 = vpack.c.bf16 %v2164_v3, %v2163_v54  ;;  %3694 = vmatprep.mubr.msk.bf16.mxu1 %vm709_vm2, %v4108_v44  ;;  %v4155_v12 = vpack.c.bf16 %v2232_v5, %v2231_v4 }
 0x472   :  { %v3520_v14 = vpop.f32.mrb[20].mxu0  ;;  %v3588_v15 = vpop.f32.mrb[20].mxu1 }
 0x473   :  { %v2169_v16 = vmax.f32 %v3520_v14, 0.0  ;;  %v1192_v17 = vpop.f32.mrb[21].mxu0  ;;  %v1464_v23 = vpop.f32.mrb[21].mxu1  ;;  %v2237_v7 = vmax.f32 %v3588_v15, 0.0 }
 0x474   :  { %v2167_v29 = vmax.f32 %v1192_v17, 0.0  ;;  %v3521_v31 = vpop.f32.mrb[22].mxu0  ;;  %v3589_v33 = vpop.f32.mrb[22].mxu1  ;;  %v2235_v44 = vmax.f32 %v1464_v23, 0.0 }
 0x475   :  { %v2170_v34 = vmax.f32 %v3521_v31, 0.0  ;;  %v1195_v35 = vpop.f32.mrb[23].mxu0  ;;  %v2238_v20 = vmax.f32 %v3589_v33, 0.0  ;;  %v1467_v37 = vpop.f32.mrb[23].mxu1 }
 0x476   :  { %v2168_v25 = vmax.f32 %v1195_v35, 0.0  ;;  %v2236_v39 = vmax.f32 %v1467_v37, 0.0  ;;  %v659_v14 = vpop.trf.xlu1  ;;  %v4178_v15 = vpop.trf.xlu0 }
 0x477   :  { %v2416_v40 = vpack.c.bf16 %v2170_v34, %v2169_v16  ;;  %3695 = vmatmul.mubr.msk.bf16.gmra.mrb[128].mxu1 %vm709_vm2, %v4120_v63  ;;  %v4161_v42 = vpack.c.bf16 %v2238_v20, %v2237_v7 }
 0x478   :  { %v2415_v27 = vpack.c.bf16 %v2168_v25, %v2167_v29  ;;  %3698 = vmatprep.mubr.msk.bf16.mxu1 %vm709_vm2, %v4132_v26  ;;  %v4165_v43 = vpack.c.bf16 %v2236_v39, %v2235_v44 }
 0x47a   :  { %v3524_v48 = vpop.f32.mrb[24].mxu0  ;;  %3309 = vmatprep.subr.bf16.mxu0 %v2415_v27  ;;  %v3592_v11 = vpop.f32.mrb[24].mxu1 }
 0x47b   :  { %v2173_v50 = vmax.f32 %v3524_v48, 0.0  ;;  %v1208_v51 = vpop.f32.mrb[25].mxu0  ;;  %3310 = vmatpush3.bf16.msra.mxu0 %v4115_v60  ;;  %v1480_v52 = vpop.f32.mrb[25].mxu1  ;;  %v2241_v26 = vmax.f32 %v3592_v11, 0.0 }
 0x47c   :  { %v2171_v63 = vmax.f32 %v1208_v51, 0.0  ;;  %v3525_v53 = vpop.f32.mrb[26].mxu0  ;;  %3311 = vmatprep.subr.bf16.mxu0 %v2416_v40  ;;  %v3593_v54 = vpop.f32.mrb[26].mxu1  ;;  %v2239_v1 = vmax.f32 %v1480_v52, 0.0 }
 0x47d   :  { %v2174_v55 = vmax.f32 %v3525_v53, 0.0  ;;  %v1211_v56 = vpop.f32.mrb[27].mxu0  ;;  %v2242_v57 = vmax.f32 %v3593_v54, 0.0  ;;  %v1483_v0 = vpop.f32.mrb[27].mxu1 }
 0x47e   :  { %v2172_v62 = vmax.f32 %v1211_v56, 0.0  ;;  %v2240_v2 = vmax.f32 %v1483_v0, 0.0  ;;  %v660_v48 = vpop.trf.xlu1  ;;  %v4188_v11 = vpop.trf.xlu0 }
 0x47f   :  { %v2418_v3 = vpack.c.bf16 %v2174_v55, %v2173_v50  ;;  %3699 = vmatmul.mubr.msk.bf16.gmra.mrb[132].mxu1 %vm709_vm2, %v4144_v49  ;;  %3312 = vmatpush3.bf16.msra.mxu0 %v4110_v58  ;;  %v4173_v60 = vpack.c.bf16 %v2242_v57, %v2241_v26 }
 0x480   :  { %v2417_v4 = vpack.c.bf16 %v2172_v62, %v2171_v63  ;;  %3702 = vmatprep.mubr.msk.bf16.mxu1 %vm709_vm2, %v657_v9  ;;  %v4176_v5 = vpack.c.bf16 %v2240_v2, %v2239_v1 }
 0x482   :  { %v3528_v16 = vpop.f32.mrb[28].mxu0  ;;  %3313 = vmatprep.subr.bf16.mxu0 %v2417_v4  ;;  %v3596_v17 = vpop.f32.mrb[28].mxu1 }
 0x483   :  { %v2177_v23 = vmax.f32 %v3528_v16, 0.0  ;;  %v1224_v29 = vpop.f32.mrb[29].mxu0  ;;  %3314 = vmatpush3.bf16.msra.mxu0 %v4127_v21  ;;  %v1496_v49 = vpop.f32.mrb[29].mxu1  ;;  %v2245_v9 = vmax.f32 %v3596_v17, 0.0 }
 0x484   :  { %v2175_v31 = vmax.f32 %v1224_v29, 0.0  ;;  %v3529_v58 = vpop.f32.mrb[30].mxu0  ;;  %3315 = vmatprep.subr.bf16.mxu0 %v2418_v3  ;;  %v3597_v33 = vpop.f32.mrb[30].mxu1  ;;  %v2243_v25 = vmax.f32 %v1496_v49, 0.0 }
 0x485   :  { %v2178_v34 = vmax.f32 %v3529_v58, 0.0  ;;  %v1227_v35 = vpop.f32.mrb[31].mxu0  ;;  %v2246_v7 = vmax.f32 %v3597_v33, 0.0  ;;  %v1499_v20 = vpop.f32.mrb[31].mxu1 }
 0x486   :  { %v2176_v37 = vmax.f32 %v1227_v35, 0.0  ;;  %v2244_v44 = vmax.f32 %v1499_v20, 0.0  ;;  %v673_v16 = vpop.trf.xlu0  ;;  %v4199_v17 = vpop.trf.xlu1  ;;  %v4210_v35 = vld [vmem:[%s4551_s4 + $0x48] sm:$0xff] }
 0x487   :  { %v2420_v39 = vpack.c.bf16 %v2178_v34, %v2177_v23  ;;  %3703 = vmatmul.mubr.msk.bf16.gmra.mrb[136].mxu1 %vm709_vm2, %v658_v30  ;;  %3316 = vmatpush3.bf16.msra.mxu0 %v4122_v18  ;;  %v4183_v40 = vpack.c.bf16 %v2246_v7, %v2245_v9 }
 0x488   :  { %v2419_v21 = vpack.c.bf16 %v2176_v37, %v2175_v31  ;;  %3706 = vmatprep.mubr.msk.bf16.mxu1 %vm709_vm2, %v659_v14  ;;  %v4186_v27 = vpack.c.bf16 %v2244_v44, %v2243_v25 }
 0x48a   :  { %v3532_v50 = vpop.f32.mrb[32].mxu0  ;;  %3317 = vmatprep.subr.bf16.mxu0 %v2419_v21  ;;  %v3600_v51 = vpop.f32.mrb[32].mxu1 }
 0x48b   :  { %v2181_v52 = vmax.f32 %v3532_v50, 0.0  ;;  %v1240_v63 = vpop.f32.mrb[33].mxu0  ;;  %3318 = vmatpush3.bf16.msra.mxu0 %v4139_v46  ;;  %v1512_v30 = vpop.f32.mrb[33].mxu1  ;;  %v2249_v26 = vmax.f32 %v3600_v51, 0.0 }
 0x48c   :  { %v2179_v53 = vmax.f32 %v1240_v63, 0.0  ;;  %v3533_v18 = vpop.f32.mrb[34].mxu0  ;;  %3319 = vmatprep.subr.bf16.mxu0 %v2420_v39  ;;  %v3601_v54 = vpop.f32.mrb[34].mxu1  ;;  %v2247_v1 = vmax.f32 %v1512_v30, 0.0 }
 0x48d   :  { %v2182_v55 = vmax.f32 %v3533_v18, 0.0  ;;  %v1243_v56 = vpop.f32.mrb[35].mxu0  ;;  %v2250_v57 = vmax.f32 %v3601_v54, 0.0  ;;  %v1515_v0 = vpop.f32.mrb[35].mxu1 }
 0x48e   :  { %v2180_v62 = vmax.f32 %v1243_v56, 0.0  ;;  %v2248_v2 = vmax.f32 %v1515_v0, 0.0  ;;  %v674_v63 = vpop.trf.xlu0  ;;  %v4227_v30 = vpop.trf.xlu1 }
 0x48f   :  { %v2422_v3 = vpack.c.bf16 %v2182_v55, %v2181_v52  ;;  %3707 = vmatmul.mubr.msk.bf16.gmra.mrb[140].mxu1 %vm709_vm2, %v660_v48  ;;  %3320 = vmatpush3.bf16.msra.mxu0 %v4134_v28  ;;  %v4193_v4 = vpack.c.bf16 %v2250_v57, %v2249_v26 }
 0x490   :  { %v2421_v46 = vpack.c.bf16 %v2180_v62, %v2179_v53  ;;  %3710 = vmatprep.mubr.msk.bf16.mxu1 %vm709_vm2, %v4157_v13  ;;  %v4197_v14 = vpack.c.bf16 %v2248_v2, %v2247_v1  ;;  %v4205_v13 = vld [vmem:[%s4551_s4 + $0x8] sm:$0xff] }
 0x491   :  { %v3161_v50 = vcombine.high %v4205_v13, %v4210_v35 }
 0x492   :  { %3321 = vmatprep.subr.bf16.mxu0 %v2421_v46  ;;  %v3604_v23 = vpop.f32.mrb[36].mxu1  ;;  %v3536_v29 = vpop.f32.mrb[36].mxu0 }
 0x493   :  { %3322 = vmatpush3.bf16.msra.mxu0 %v4151_v10  ;;  %v1528_v49 = vpop.f32.mrb[37].mxu1  ;;  %v2185_v31 = vmax.f32 %v3536_v29, 0.0  ;;  %v1256_v58 = vpop.f32.mrb[37].mxu0  ;;  %v2253_v9 = vmax.f32 %v3604_v23, 0.0 }
 0x494   :  { %3323 = vmatprep.subr.bf16.mxu0 %v2422_v3  ;;  %v3605_v28 = vpop.f32.mrb[38].mxu1  ;;  %v2183_v33 = vmax.f32 %v1256_v58, 0.0  ;;  %v3537_v34 = vpop.f32.mrb[38].mxu0  ;;  %v2251_v25 = vmax.f32 %v1528_v49, 0.0 }
 0x495   :  { %v2254_v7 = vmax.f32 %v3605_v28, 0.0  ;;  %v1531_v10 = vpop.f32.mrb[39].mxu1  ;;  %v2186_v20 = vmax.f32 %v3537_v34, 0.0  ;;  %v1259_v37 = vpop.f32.mrb[39].mxu0 }
 0x496   :  { %v2252_v44 = vmax.f32 %v1531_v10, 0.0  ;;  %v2184_v39 = vmax.f32 %v1259_v37, 0.0  ;;  %v675_v29 = vpop.trf.xlu0  ;;  %v4243_v49 = vpop.trf.xlu1 }
 0x497   :  { %3711 = vmatmul.mubr.msk.bf16.gmra.mrb[144].mxu1 %vm709_vm2, %v4167_v41  ;;  %3324 = vmatpush3.bf16.msra.mxu0 %v4146_v6  ;;  %v4215_v21 = vpack.c.bf16 %v2254_v7, %v2253_v9  ;;  %v4217_v48 = vpack.c.bf16 %v2186_v20, %v2185_v31 }
 0x498   :  { %3714 = vmatprep.mubr.msk.bf16.mxu1 %vm709_vm2, %v4178_v15  ;;  %v4223_v51 = vpack.c.bf16 %v2252_v44, %v2251_v25  ;;  %v4225_v52 = vpack.c.bf16 %v2184_v39, %v2183_v33 }
 0x49a   :  { %v3540_v41 = vpop.f32.mrb[40].mxu0  ;;  %v3608_v53 = vpop.f32.mrb[40].mxu1  ;;  %2664 = vmatmul.mubr.bf16.vlgmr.msra.gmra.mrb[72].mxu0 %v3158_v24 }
 0x49b   :  { %v2189_v6 = vmax.f32 %v3540_v41, 0.0  ;;  %v1272_v18 = vpop.f32.mrb[41].mxu0  ;;  %v1544_v54 = vpop.f32.mrb[41].mxu1  ;;  %2703 = vmatprep.mubr.bf16.mxu0 %v3161_v50  ;;  %v2257_v26 = vmax.f32 %v3608_v53, 0.0 }
 0x49c   :  { %v2187_v55 = vmax.f32 %v1272_v18, 0.0  ;;  %v3541_v56 = vpop.f32.mrb[42].mxu0  ;;  %v3609_v15 = vpop.f32.mrb[42].mxu1  ;;  %v2255_v2 = vmax.f32 %v1544_v54, 0.0 }
 0x49d   :  { %v2190_v57 = vmax.f32 %v3541_v56, 0.0  ;;  %v1275_v0 = vpop.f32.mrb[43].mxu0  ;;  %v2258_v62 = vmax.f32 %v3609_v15, 0.0  ;;  %v1547_v1 = vpop.f32.mrb[43].mxu1 }
 0x49e   :  { %v2188_v3 = vmax.f32 %v1275_v0, 0.0  ;;  %v2256_v46 = vmax.f32 %v1547_v1, 0.0  ;;  %v676_v54 = vpop.trf.xlu0 }
 0x49f   :  { %3715 = vmatmul.mubr.msk.bf16.gmra.mrb[148].mxu1 %vm709_vm2, %v4188_v11  ;;  %v4234_v36 = vpack.c.bf16 %v2190_v57, %v2189_v6  ;;  %v4236_v38 = vpack.c.bf16 %v2258_v62, %v2257_v26 }
 0x4a0   :  { %3718 = vmatprep.mubr.msk.bf16.mxu1 %vm709_vm2, %v673_v16  ;;  %v4239_v24 = vpack.c.bf16 %v2188_v3, %v2187_v55  ;;  %v4241_v23 = vpack.c.bf16 %v2256_v46, %v2255_v2  ;;  %v4255_v55 = vpop.trf.xlu1 }
 0x4a2   :  { %v3544_v31 = vpop.f32.mrb[44].mxu0  ;;  %v3612_v58 = vpop.f32.mrb[44].mxu1 }
 0x4a3   :  { %v2193_v28 = vmax.f32 %v3544_v31, 0.0  ;;  %v1288_v33 = vpop.f32.mrb[45].mxu0  ;;  %v1560_v34 = vpop.f32.mrb[45].mxu1  ;;  %v2261_v37 = vmax.f32 %v3612_v58, 0.0 }
 0x4a4   :  { %v2191_v9 = vmax.f32 %v1288_v33, 0.0  ;;  %v3545_v11 = vpop.f32.mrb[46].mxu0  ;;  %v3613_v7 = vpop.f32.mrb[46].mxu1  ;;  %v2259_v39 = vmax.f32 %v1560_v34, 0.0 }
 0x4a5   :  { %v2194_v10 = vmax.f32 %v3545_v11, 0.0  ;;  %v1291_v20 = vpop.f32.mrb[47].mxu0  ;;  %v2262_v25 = vmax.f32 %v3613_v7, 0.0  ;;  %v1563_v16 = vpop.f32.mrb[47].mxu1 }
 0x4a6   :  { %v2192_v44 = vmax.f32 %v1291_v20, 0.0  ;;  %v2260_v50 = vmax.f32 %v1563_v16, 0.0 }
 0x4a7   :  { %3719 = vmatmul.mubr.msk.bf16.gmra.mrb[152].mxu1 %vm709_vm2, %v674_v63  ;;  %v4246_v41 = vpack.c.bf16 %v2194_v10, %v2193_v28  ;;  %v4248_v53 = vpack.c.bf16 %v2262_v25, %v2261_v37  ;;  %v689_v10 = vpop.trf.xlu1 }
 0x4a8   :  { %v4250_v6 = vpack.c.bf16 %v2192_v44, %v2191_v9  ;;  %3722 = vmatprep.mubr.msk.bf16.mxu1 %vm709_vm2, %v675_v29  ;;  %v4253_v18 = vpack.c.bf16 %v2260_v50, %v2259_v39 }
 0x4aa   :  { %v3548_v56 = vpop.f32.mrb[48].mxu0  ;;  %v3616_v15 = vpop.f32.mrb[48].mxu1 }
 0x4ab   :  { %v2197_v26 = vmax.f32 %v3548_v56, 0.0  ;;  %v1304_v57 = vpop.f32.mrb[49].mxu0  ;;  %v1576_v0 = vpop.f32.mrb[49].mxu1  ;;  %v2265_v46 = vmax.f32 %v3616_v15, 0.0 }
 0x4ac   :  { %v2195_v62 = vmax.f32 %v1304_v57, 0.0  ;;  %v3549_v63 = vpop.f32.mrb[50].mxu0  ;;  %v3617_v1 = vpop.f32.mrb[50].mxu1  ;;  %v2263_v29 = vmax.f32 %v1576_v0, 0.0 }
 0x4ad   :  { %v2198_v2 = vmax.f32 %v3549_v63, 0.0  ;;  %v1307_v3 = vpop.f32.mrb[51].mxu0  ;;  %v2266_v31 = vmax.f32 %v3617_v1, 0.0  ;;  %v1579_v58 = vpop.f32.mrb[51].mxu1 }
 0x4ae   :  { %v2196_v28 = vmax.f32 %v1307_v3, 0.0  ;;  %v2264_v33 = vmax.f32 %v1579_v58, 0.0  ;;  %v4276_v58 = vpop.trf.xlu0 }
 0x4af   :  { %3723 = vmatmul.mubr.msk.bf16.gmra.mrb[156].mxu1 %vm709_vm2, %v676_v54  ;;  %v4258_v34 = vpack.c.bf16 %v2198_v2, %v2197_v26  ;;  %v4260_v9 = vpack.c.bf16 %v2266_v31, %v2265_v46  ;;  %v690_v31 = vpop.trf.xlu1 }
 0x4b0   :  { %v4262_v11 = vpack.c.bf16 %v2196_v28, %v2195_v62  ;;  %3726 = vmatprep.mubr.msk.bf16.mxu1 %vm709_vm2, %v4199_v17  ;;  %v4266_v7 = vpack.c.bf16 %v2264_v33, %v2263_v29 }
 0x4b2   :  { %v3552_v20 = vpop.f32.mrb[52].mxu0  ;;  %v3620_v37 = vpop.f32.mrb[52].mxu1 }
 0x4b3   :  { %v2201_v25 = vmax.f32 %v3552_v20, 0.0  ;;  %v1320_v16 = vpop.f32.mrb[53].mxu0  ;;  %v1592_v44 = vpop.f32.mrb[53].mxu1  ;;  %v2269_v26 = vmax.f32 %v3620_v37, 0.0 }
 0x4b4   :  { %v2199_v39 = vmax.f32 %v1320_v16, 0.0  ;;  %v3553_v50 = vpop.f32.mrb[54].mxu0  ;;  %v3621_v54 = vpop.f32.mrb[54].mxu1  ;;  %v2267_v63 = vmax.f32 %v1592_v44, 0.0 }
 0x4b5   :  { %v2202_v56 = vmax.f32 %v3553_v50, 0.0  ;;  %v1323_v15 = vpop.f32.mrb[55].mxu0  ;;  %v2270_v57 = vmax.f32 %v3621_v54, 0.0  ;;  %v1595_v0 = vpop.f32.mrb[55].mxu1 }
 0x4b6   :  { %v2200_v62 = vmax.f32 %v1323_v15, 0.0  ;;  %v2268_v1 = vmax.f32 %v1595_v0, 0.0 }
 0x4b7   :  { %v2432_v17 = vpack.c.bf16 %v2202_v56, %v2201_v25  ;;  %3727 = vmatmul.mubr.msk.bf16.gmra.mrb[160].mxu1 %vm709_vm2, %v4227_v30  ;;  %v4270_v2 = vpack.c.bf16 %v2270_v57, %v2269_v26 }
 0x4b8   :  { %v2431_v3 = vpack.c.bf16 %v2200_v62, %v2199_v39  ;;  %3730 = vmatprep.mubr.msk.bf16.mxu1 %vm709_vm2, %v4243_v49  ;;  %v4274_v46 = vpack.c.bf16 %v2268_v1, %v2267_v63  ;;  %v691_v63 = vpop.trf.xlu1  ;;  %v4287_v1 = vpop.trf.xlu0 }
 0x4ba   :  { %v3556_v28 = vpop.f32.mrb[56].mxu0  ;;  %3331 = vmatprep.subr.bf16.mxu0 %v2431_v3  ;;  %v3624_v29 = vpop.f32.mrb[56].mxu1 }
 0x4bb   :  { %v2205_v33 = vmax.f32 %v3556_v28, 0.0  ;;  %v1336_v20 = vpop.f32.mrb[57].mxu0  ;;  %3332 = vmatpush3.bf16.msra.mxu0 %v4225_v52  ;;  %v1608_v37 = vpop.f32.mrb[57].mxu1  ;;  %v2273_v49 = vmax.f32 %v3624_v29, 0.0 }
 0x4bc   :  { %v2203_v30 = vmax.f32 %v1336_v20, 0.0  ;;  %v3557_v25 = vpop.f32.mrb[58].mxu0  ;;  %3333 = vmatprep.subr.bf16.mxu0 %v2432_v17  ;;  %v3625_v16 = vpop.f32.mrb[58].mxu1  ;;  %v2271_v15 = vmax.f32 %v1608_v37, 0.0 }
 0x4bd   :  { %v2206_v44 = vmax.f32 %v3557_v25, 0.0  ;;  %v1339_v39 = vpop.f32.mrb[59].mxu0  ;;  %v2274_v50 = vmax.f32 %v3625_v16, 0.0  ;;  %v1611_v54 = vpop.f32.mrb[59].mxu1 }
 0x4be   :  { %v2204_v56 = vmax.f32 %v1339_v39, 0.0  ;;  %v2272_v26 = vmax.f32 %v1611_v54, 0.0 }
 0x4bf   :  { %v2434_v57 = vpack.c.bf16 %v2206_v44, %v2205_v33  ;;  %3731 = vmatmul.mubr.msk.bf16.gmra.mrb[164].mxu1 %vm709_vm2, %v4255_v55  ;;  %3334 = vmatpush3.bf16.msra.mxu0 %v4217_v48  ;;  %v4282_v52 = vpack.c.bf16 %v2274_v50, %v2273_v49 }
 0x4c0   :  { %v2433_v0 = vpack.c.bf16 %v2204_v56, %v2203_v30  ;;  %3734 = vmatprep.mubr.msk.bf16.mxu1 %vm709_vm2, %v689_v10  ;;  %v4285_v62 = vpack.c.bf16 %v2272_v26, %v2271_v15  ;;  %v692_v15 = vpop.trf.xlu1  ;;  %v703_v26 = vpop.trf.xlu0 }
 0x4c2   :  { %v3560_v17 = vpop.f32.mrb[60].mxu0  ;;  %3335 = vmatprep.subr.bf16.mxu0 %v2433_v0  ;;  %v3628_v3 = vpop.f32.mrb[60].mxu1 }
 0x4c3   :  { %v2209_v28 = vmax.f32 %v3560_v17, 0.0  ;;  %v1352_v29 = vpop.f32.mrb[61].mxu0  ;;  %3336 = vmatpush3.bf16.msra.mxu0 %v4239_v24  ;;  %v1624_v55 = vpop.f32.mrb[61].mxu1  ;;  %v2277_v10 = vmax.f32 %v3628_v3, 0.0 }
 0x4c4   :  { %v2207_v33 = vmax.f32 %v1352_v29, 0.0  ;;  %v3561_v48 = vpop.f32.mrb[62].mxu0  ;;  %3337 = vmatprep.subr.bf16.mxu0 %v2434_v57  ;;  %v3629_v20 = vpop.f32.mrb[62].mxu1  ;;  %v2275_v39 = vmax.f32 %v1624_v55, 0.0 }
 0x4c5   :  { %v2210_v37 = vmax.f32 %v3561_v48, 0.0  ;;  %v1355_v30 = vpop.f32.mrb[63].mxu0  ;;  %v2278_v25 = vmax.f32 %v3629_v20, 0.0  ;;  %v1627_v16 = vpop.f32.mrb[63].mxu1 }
 0x4c6   :  { %v2208_v44 = vmax.f32 %v1355_v30, 0.0  ;;  %v2276_v49 = vmax.f32 %v1627_v16, 0.0 }
 0x4c7   :  { %v2436_v50 = vpack.c.bf16 %v2210_v37, %v2209_v28  ;;  %3735 = vmatmul.mubr.msk.bf16.gmra.mrb[168].mxu1 %vm709_vm2, %v690_v31  ;;  %3338 = vmatpush3.bf16.msra.mxu0 %v4234_v36  ;;  %v4292_v54 = vpack.c.bf16 %v2278_v25, %v2277_v10 }
 0x4c8   :  { %v2435_v24 = vpack.c.bf16 %v2208_v44, %v2207_v33  ;;  %3738 = vmatprep.mubr.msk.bf16.mxu1 %vm709_vm2, %v691_v63  ;;  %v4295_v56 = vpack.c.bf16 %v2276_v49, %v2275_v39  ;;  %v704_v39 = vpop.trf.xlu0 }
 0x4ca   :  { %v3564_v57 = vpop.f32.mrb[64].mxu0  ;;  %3339 = vmatprep.subr.bf16.mxu0 %v2435_v24  ;;  %v3632_v0 = vpop.f32.mrb[64].mxu1 }
 0x4cb   :  { %v2213_v17 = vmax.f32 %v3564_v57, 0.0  ;;  %v1368_v3 = vpop.f32.mrb[65].mxu0  ;;  %3340 = vmatpush3.bf16.msra.mxu0 %v4250_v6  ;;  %v1640_v28 = vpop.f32.mrb[65].mxu1  ;;  %v2281_v48 = vmax.f32 %v3632_v0, 0.0 }
 0x4cc   :  { %v2211_v31 = vmax.f32 %v1368_v3, 0.0  ;;  %v3565_v29 = vpop.f32.mrb[66].mxu0  ;;  %3341 = vmatprep.subr.bf16.mxu0 %v2436_v50  ;;  %v3633_v36 = vpop.f32.mrb[66].mxu1  ;;  %v2279_v30 = vmax.f32 %v1640_v28, 0.0 }
 0x4cd   :  { %v2214_v55 = vmax.f32 %v3565_v29, 0.0  ;;  %v1371_v33 = vpop.f32.mrb[67].mxu0  ;;  %v2282_v63 = vmax.f32 %v3633_v36, 0.0  ;;  %v1643_v20 = vpop.f32.mrb[67].mxu1 }
 0x4ce   :  { %v2212_v37 = vmax.f32 %v1371_v33, 0.0  ;;  %v2280_v10 = vmax.f32 %v1643_v20, 0.0 }
 0x4cf   :  { %v2438_v25 = vpack.c.bf16 %v2214_v55, %v2213_v17  ;;  %3739 = vmatmul.mubr.msk.bf16.gmra.mrb[172].mxu1 %vm709_vm2, %v692_v15  ;;  %3342 = vmatpush3.bf16.msra.mxu0 %v4246_v41  ;;  %v4300_v16 = vpack.c.bf16 %v2282_v63, %v2281_v48  ;;  %v3160_v41 = vcombine.low %v4205_v13, %v4210_v35  ;;  %v4317_v17 = vld [vmem:[%s4551_s4 + $0x50] sm:$0xff] }
 0x4d0   :  { %v2437_v6 = vpack.c.bf16 %v2212_v37, %v2211_v31  ;;  %3742 = vmatprep.mubr.msk.bf16.mxu1 %vm709_vm2, %v4276_v58  ;;  %v4304_v44 = vpack.c.bf16 %v2280_v10, %v2279_v30  ;;  %v4312_v58 = vld [vmem:[%s4551_s4 + $0x10] sm:$0xff]  ;;  %v705_v10 = vpop.trf.xlu0 }
 0x4d1   :  { %v3163_v20 = vcombine.high %v4312_v58, %v4317_v17 }
 0x4d2   :  { %v3568_v49 = vpop.f32.mrb[68].mxu0  ;;  %3343 = vmatprep.subr.bf16.mxu0 %v2437_v6  ;;  %v3636_v50 = vpop.f32.mrb[68].mxu1 }
 0x4d3   :  { %v1384_v24 = vpop.f32.mrb[69].mxu0  ;;  %3344 = vmatpush3.bf16.msra.mxu0 %v4262_v11  ;;  %v1656_v57 = vpop.f32.mrb[69].mxu1  ;;  %v2217_v3 = vmax.f32 %v3568_v49, 0.0  ;;  %v2285_v31 = vmax.f32 %v3636_v50, 0.0 }
 0x4d4   :  { %v3569_v0 = vpop.f32.mrb[70].mxu0  ;;  %3345 = vmatprep.subr.bf16.mxu0 %v2438_v25  ;;  %v3637_v15 = vpop.f32.mrb[70].mxu1  ;;  %v2215_v55 = vmax.f32 %v1384_v24, 0.0  ;;  %v2283_v13 = vmax.f32 %v1656_v57, 0.0 }
 0x4d5   :  { %v2218_v28 = vmax.f32 %v3569_v0, 0.0  ;;  %v1387_v11 = vpop.f32.mrb[71].mxu0  ;;  %v2286_v29 = vmax.f32 %v3637_v15, 0.0  ;;  %v1659_v36 = vpop.f32.mrb[71].mxu1 }
 0x4d6   :  { %v2216_v33 = vmax.f32 %v1387_v11, 0.0  ;;  %v2284_v35 = vmax.f32 %v1659_v36, 0.0 }
 0x4d7   :  { %v2440_v48 = vpack.c.bf16 %v2218_v28, %v2217_v3  ;;  %3743 = vmatmul.mubr.msk.bf16.gmra.mrb[176].mxu1 %vm709_vm2, %v4287_v1  ;;  %3346 = vmatpush3.bf16.msra.mxu0 %v4258_v34  ;;  %v4322_v63 = vpack.c.bf16 %v2286_v29, %v2285_v31 }
 0x4d8   :  { %v2439_v37 = vpack.c.bf16 %v2216_v33, %v2215_v55  ;;  %3353 = vmatprep.subr.bf16.mxu0 %v4155_v12  ;;  %3746 = vmatprep.mubr.msk.bf16.mxu1 %vm709_vm2, %v703_v26  ;;  %v4328_v30 = vpack.c.bf16 %v2284_v35, %v2283_v13  ;;  %v706_v12 = vpop.trf.xlu0 }
 0x4da   :  { %2704 = vmatmul.mubr.bf16.vlgmr.msra.gmra.mrb[76].mxu0 %v3160_v41  ;;  %v3640_v25 = vpop.f32.mrb[72].mxu1 }
 0x4db   :  { %3354 = vmatpush3.bf16.msra.mxu0 %v2439_v37  ;;  %v1672_v6 = vpop.f32.mrb[73].mxu1  ;;  %2743 = vmatprep.mubr.bf16.mxu0 %v3163_v20  ;;  %v2289_v1 = vmax.f32 %v3640_v25, 0.0  ;;  %v4362_v25 = vld [vmem:[%s4551_s4 + $0x18] sm:$0xff] }
 0x4dc   :  { %3355 = vmatprep.subr.bf16.mxu0 %v4149_v8  ;;  %v3641_v34 = vpop.f32.mrb[74].mxu1  ;;  %v2287_v24 = vmax.f32 %v1672_v6, 0.0  ;;  %v707_v3 = vpop.trf.xlu0 }
 0x4dd   :  { %v2290_v49 = vmax.f32 %v3641_v34, 0.0  ;;  %v1675_v50 = vpop.f32.mrb[75].mxu1 }
 0x4de   :  { %v2288_v57 = vmax.f32 %v1675_v50, 0.0 }
 0x4df   :  { %3747 = vmatmul.mubr.msk.bf16.gmra.mrb[180].mxu1 %vm709_vm2, %v704_v39  ;;  %3356 = vmatpush3.bf16.msra.mxu0 %v2440_v48  ;;  %v4332_v26 = vpack.c.bf16 %v2290_v49, %v2289_v1 }
 0x4e0   :  { %3357 = vmatprep.subr.bf16.mxu0 %v4165_v43  ;;  %3750 = vmatprep.mubr.msk.bf16.mxu1 %vm709_vm2, %v705_v10  ;;  %v4336_v0 = vpack.c.bf16 %v2288_v57, %v2287_v24  ;;  %v708_v55 = vpop.trf.xlu0 }
 0x4e2   :  { %v3644_v41 = vpop.f32.mrb[76].mxu1 }
 0x4e3   :  { %3358 = vmatpush3.bf16.msra.mxu0 %v4117_v61  ;;  %v1688_v8 = vpop.f32.mrb[77].mxu1  ;;  %v2293_v28 = vmax.f32 %v3644_v41, 0.0 }
 0x4e4   :  { %3359 = vmatprep.subr.bf16.mxu0 %v4161_v42  ;;  %v3645_v15 = vpop.f32.mrb[78].mxu1  ;;  %v2291_v31 = vmax.f32 %v1688_v8, 0.0 }
 0x4e5   :  { %v2294_v39 = vmax.f32 %v3645_v15, 0.0  ;;  %v1691_v11 = vpop.f32.mrb[79].mxu1 }
 0x4e6   :  { %v2292_v29 = vmax.f32 %v1691_v11, 0.0 }
 0x4e7   :  { %3751 = vmatmul.mubr.msk.bf16.gmra.mrb[184].mxu1 %vm709_vm2, %v706_v12  ;;  %3360 = vmatpush3.bf16.msra.mxu0 %v4112_v59  ;;  %v4342_v43 = vpack.c.bf16 %v2294_v39, %v2293_v28 }
 0x4e8   :  { %3361 = vmatprep.subr.bf16.mxu0 %v4176_v5  ;;  %3754 = vmatprep.mubr.msk.bf16.mxu1 %vm709_vm2, %v707_v3  ;;  %v4346_v61 = vpack.c.bf16 %v2292_v29, %v2291_v31 }
 0x4ea   :  { %v3648_v42 = vpop.f32.mrb[80].mxu1 }
 0x4eb   :  { %3362 = vmatpush3.bf16.msra.mxu0 %v4129_v22  ;;  %v1704_v36 = vpop.f32.mrb[81].mxu1  ;;  %v2297_v13 = vmax.f32 %v3648_v42, 0.0 }
 0x4ec   :  { %3363 = vmatprep.subr.bf16.mxu0 %v4173_v60  ;;  %v3649_v33 = vpop.f32.mrb[82].mxu1  ;;  %v2295_v59 = vmax.f32 %v1704_v36, 0.0 }
 0x4ed   :  { %v2298_v35 = vmax.f32 %v3649_v33, 0.0  ;;  %v1707_v48 = vpop.f32.mrb[83].mxu1 }
 0x4ee   :  { %v2296_v20 = vmax.f32 %v1707_v48, 0.0 }
 0x4ef   :  { %3755 = vmatmul.mubr.msk.bf16.gmra.mrb[188].mxu1 %vm709_vm2, %v708_v55  ;;  %3364 = vmatpush3.bf16.msra.mxu0 %v4124_v19  ;;  %v4352_v5 = vpack.c.bf16 %v2298_v35, %v2297_v13  ;;  %v4367_v19 = vld [vmem:[%s4551_s4 + $0x58] sm:$0xff] }
 0x4f0   :  { %3365 = vmatprep.subr.bf16.mxu0 %v4186_v27  ;;  %v4355_v37 = vpack.c.bf16 %v2296_v20, %v2295_v59  ;;  %v3165_v50 = vcombine.high %v4362_v25, %v4367_v19  ;;  %v4408_v20 = vld [vmem:[%s4551_s4 + $0x20] sm:$0xff] }
 0x4f2   :  { %v3652_v22 = vpop.f32.mrb[84].mxu1 }
 0x4f3   :  { %3366 = vmatpush3.bf16.msra.mxu0 %v4141_v47  ;;  %v1720_v60 = vpop.f32.mrb[85].mxu1  ;;  %v2301_v27 = vmax.f32 %v3652_v22, 0.0  ;;  %v3162_v47 = vcombine.low %v4312_v58, %v4317_v17 }
 0x4f4   :  { %3367 = vmatprep.subr.bf16.mxu0 %v4183_v40  ;;  %v3653_v10 = vpop.f32.mrb[86].mxu1  ;;  %v2299_v1 = vmax.f32 %v1720_v60, 0.0 }
 0x4f5   :  { %v2302_v6 = vmax.f32 %v3653_v10, 0.0  ;;  %v1723_v34 = vpop.f32.mrb[87].mxu1 }
 0x4f6   :  { %v2300_v49 = vmax.f32 %v1723_v34, 0.0 }
 0x4f7   :  { %3368 = vmatpush3.bf16.msra.mxu0 %v4136_v45  ;;  %v4372_v40 = vpack.c.bf16 %v2302_v6, %v2301_v27 }
 0x4f8   :  { %3375 = vmatprep.subr.bf16.mxu0 %v4266_v7  ;;  %v4377_v24 = vpack.c.bf16 %v2300_v49, %v2299_v1 }
 0x4fa   :  { %2744 = vmatmul.mubr.bf16.vlgmr.msra.gmra.mrb[80].mxu0 %v3162_v47  ;;  %v3656_v57 = vpop.f32.mrb[88].mxu1 }
 0x4fb   :  { %3376 = vmatpush3.bf16.msra.mxu0 %v4197_v14  ;;  %v1736_v12 = vpop.f32.mrb[89].mxu1  ;;  %2783 = vmatprep.mubr.bf16.mxu0 %v3165_v50  ;;  %v2305_v17 = vmax.f32 %v3656_v57, 0.0 }
 0x4fc   :  { %3377 = vmatprep.subr.bf16.mxu0 %v4260_v9  ;;  %v3657_v58 = vpop.f32.mrb[90].mxu1  ;;  %v2303_v8 = vmax.f32 %v1736_v12, 0.0 }
 0x4fd   :  { %v2306_v45 = vmax.f32 %v3657_v58, 0.0  ;;  %v1739_v41 = vpop.f32.mrb[91].mxu1 }
 0x4fe   :  { %v2304_v15 = vmax.f32 %v1739_v41, 0.0 }
 0x4ff   :  { %3378 = vmatpush3.bf16.msra.mxu0 %v4193_v4  ;;  %v4382_v3 = vpack.c.bf16 %v2306_v45, %v2305_v17 }
 0x500   :  { %3379 = vmatprep.subr.bf16.mxu0 %v4274_v46  ;;  %v4385_v7 = vpack.c.bf16 %v2304_v15, %v2303_v8 }
 0x502   :  { %v3660_v28 = vpop.f32.mrb[92].mxu1 }
 0x503   :  { %3380 = vmatpush3.bf16.msra.mxu0 %v4223_v51  ;;  %v1752_v14 = vpop.f32.mrb[93].mxu1  ;;  %v2309_v39 = vmax.f32 %v3660_v28, 0.0 }
 0x504   :  { %3381 = vmatprep.subr.bf16.mxu0 %v4270_v2  ;;  %v3661_v9 = vpop.f32.mrb[94].mxu1  ;;  %v2307_v29 = vmax.f32 %v1752_v14, 0.0 }
 0x505   :  { %v2310_v11 = vmax.f32 %v3661_v9, 0.0  ;;  %v1755_v31 = vpop.f32.mrb[95].mxu1 }
 0x506   :  { %v2308_v42 = vmax.f32 %v1755_v31, 0.0 }
 0x507   :  { %3382 = vmatpush3.bf16.msra.mxu0 %v4215_v21  ;;  %v4390_v4 = vpack.c.bf16 %v2310_v11, %v2309_v39 }
 0x508   :  { %3383 = vmatprep.subr.bf16.mxu0 %v4285_v62  ;;  %v4393_v46 = vpack.c.bf16 %v2308_v42, %v2307_v29 }
 0x50a   :  { %v3664_v36 = vpop.f32.mrb[96].mxu1 }
 0x50b   :  { %3384 = vmatpush3.bf16.msra.mxu0 %v4241_v23  ;;  %v1768_v51 = vpop.f32.mrb[97].mxu1  ;;  %v2313_v55 = vmax.f32 %v3664_v36, 0.0 }
 0x50c   :  { %3385 = vmatprep.subr.bf16.mxu0 %v4282_v52  ;;  %v3665_v2 = vpop.f32.mrb[98].mxu1  ;;  %v2311_v35 = vmax.f32 %v1768_v51, 0.0 }
 0x50d   :  { %v2314_v33 = vmax.f32 %v3665_v2, 0.0  ;;  %v1771_v13 = vpop.f32.mrb[99].mxu1 }
 0x50e   :  { %v2312_v48 = vmax.f32 %v1771_v13, 0.0 }
 0x50f   :  { %3386 = vmatpush3.bf16.msra.mxu0 %v4236_v38  ;;  %v4398_v21 = vpack.c.bf16 %v2314_v33, %v2313_v55  ;;  %v4413_v38 = vld [vmem:[%s4551_s4 + $0x60] sm:$0xff] }
 0x510   :  { %3387 = vmatprep.subr.bf16.mxu0 %v4295_v56  ;;  %v4401_v62 = vpack.c.bf16 %v2312_v48, %v2311_v35  ;;  %v3167_v6 = vcombine.high %v4408_v20, %v4413_v38 }
 0x512   :  { %v3668_v59 = vpop.f32.mrb[100].mxu1 }
 0x513   :  { %3388 = vmatpush3.bf16.msra.mxu0 %v4253_v18  ;;  %v1784_v23 = vpop.f32.mrb[101].mxu1  ;;  %v2317_v56 = vmax.f32 %v3668_v59, 0.0  ;;  %v3164_v18 = vcombine.low %v4362_v25, %v4367_v19 }
 0x514   :  { %3389 = vmatprep.subr.bf16.mxu0 %v4292_v54  ;;  %v3669_v52 = vpop.f32.mrb[102].mxu1  ;;  %v2315_v10 = vmax.f32 %v1784_v23, 0.0 }
 0x515   :  { %v2318_v22 = vmax.f32 %v3669_v52, 0.0  ;;  %v1787_v60 = vpop.f32.mrb[103].mxu1 }
 0x516   :  { %v2316_v27 = vmax.f32 %v1787_v60, 0.0 }
 0x517   :  { %3390 = vmatpush3.bf16.msra.mxu0 %v4248_v53  ;;  %v4418_v54 = vpack.c.bf16 %v2318_v22, %v2317_v56 }
 0x518   :  { %3397 = vmatprep.subr.bf16.mxu0 %v4355_v37  ;;  %v4423_v34 = vpack.c.bf16 %v2316_v27, %v2315_v10 }
 0x51a   :  { %2784 = vmatmul.mubr.bf16.vlgmr.msra.gmra.mrb[84].mxu0 %v3164_v18  ;;  %v3672_v47 = vpop.f32.mrb[104].mxu1 }
 0x51b   :  { %3398 = vmatpush3.bf16.msra.mxu0 %v4304_v44  ;;  %v1800_v1 = vpop.f32.mrb[105].mxu1  ;;  %2823 = vmatprep.mubr.bf16.mxu0 %v3167_v6  ;;  %v2321_v19 = vmax.f32 %v3672_v47, 0.0 }
 0x51c   :  { %3399 = vmatprep.subr.bf16.mxu0 %v4352_v5  ;;  %v3673_v25 = vpop.f32.mrb[106].mxu1  ;;  %v2319_v50 = vmax.f32 %v1800_v1, 0.0 }
 0x51d   :  { %v2322_v53 = vmax.f32 %v3673_v25, 0.0  ;;  %v1803_v49 = vpop.f32.mrb[107].mxu1 }
 0x51e   :  { %v2320_v57 = vmax.f32 %v1803_v49, 0.0 }
 0x51f   :  { %3400 = vmatpush3.bf16.msra.mxu0 %v4300_v16  ;;  %v4428_v12 = vpack.c.bf16 %v2322_v53, %v2321_v19 }
 0x520   :  { %3401 = vmatprep.subr.bf16.mxu0 %v4377_v24  ;;  %v4431_v37 = vpack.c.bf16 %v2320_v57, %v2319_v50 }
 0x522   :  { %v3676_v58 = vpop.f32.mrb[108].mxu1 }
 0x523   :  { %3402 = vmatpush3.bf16.msra.mxu0 %v4328_v30  ;;  %v1816_v44 = vpop.f32.mrb[109].mxu1  ;;  %v2325_v17 = vmax.f32 %v3676_v58, 0.0 }
 0x524   :  { %3403 = vmatprep.subr.bf16.mxu0 %v4372_v40  ;;  %v3677_v5 = vpop.f32.mrb[110].mxu1  ;;  %v2323_v8 = vmax.f32 %v1816_v44, 0.0 }
 0x525   :  { %v2326_v45 = vmax.f32 %v3677_v5, 0.0  ;;  %v1819_v41 = vpop.f32.mrb[111].mxu1 }
 0x526   :  { %v2324_v15 = vmax.f32 %v1819_v41, 0.0  ;;  %v4474_v41 = vld [vmem:[%s4551_s4 + $0x30] sm:$0xff] }
 0x527   :  { %3404 = vmatpush3.bf16.msra.mxu0 %v4322_v63  ;;  %v4436_v16 = vpack.c.bf16 %v2326_v45, %v2325_v17 }
 0x528   :  { %3405 = vmatprep.subr.bf16.mxu0 %v4385_v7  ;;  %v4439_v24 = vpack.c.bf16 %v2324_v15, %v2323_v8  ;;  %v4479_v8 = vld [vmem:[%s4551_s4 + $0x70] sm:$0xff] }
 0x52a   :  { %v3680_v28 = vpop.f32.mrb[112].mxu1 }
 0x52b   :  { %3406 = vmatpush3.bf16.msra.mxu0 %v4336_v0  ;;  %v1832_v30 = vpop.f32.mrb[113].mxu1  ;;  %v2329_v14 = vmax.f32 %v3680_v28, 0.0 }
 0x52c   :  { %3407 = vmatprep.subr.bf16.mxu0 %v4382_v3  ;;  %v3681_v40 = vpop.f32.mrb[114].mxu1  ;;  %v2327_v11 = vmax.f32 %v1832_v30, 0.0  ;;  %v4450_v3 = vld [vmem:[%s4551_s4 + $0x28] sm:$0xff] }
 0x52d   :  { %v2330_v9 = vmax.f32 %v3681_v40, 0.0  ;;  %v1835_v39 = vpop.f32.mrb[115].mxu1 }
 0x52e   :  { %v2328_v31 = vmax.f32 %v1835_v39, 0.0 }
 0x52f   :  { %3408 = vmatpush3.bf16.msra.mxu0 %v4332_v26  ;;  %v2496_v63 = vpack.c.bf16 %v2330_v9, %v2329_v14  ;;  %v4455_v26 = vld [vmem:[%s4551_s4 + $0x68] sm:$0xff]  ;;  %v3171_v9 = vcombine.high %v4474_v41, %v4479_v8 }
 0x530   :  { %3409 = vmatprep.subr.bf16.mxu0 %v4393_v46  ;;  %v2495_v7 = vpack.c.bf16 %v2328_v31, %v2327_v11  ;;  %v3169_v33 = vcombine.high %v4450_v3, %v4455_v26  ;;  %v3168_v30 = vcombine.low %v4450_v3, %v4455_v26 }
 0x532   :  { %v3684_v29 = vpop.f32.mrb[116].mxu1 }
 0x533   :  { %3410 = vmatpush3.bf16.msra.mxu0 %v4346_v61  ;;  %v1848_v42 = vpop.f32.mrb[117].mxu1  ;;  %v2333_v36 = vmax.f32 %v3684_v29, 0.0  ;;  %v3166_v61 = vcombine.low %v4408_v20, %v4413_v38 }
 0x534   :  { %3411 = vmatprep.subr.bf16.mxu0 %v4390_v4  ;;  %v3685_v0 = vpop.f32.mrb[118].mxu1  ;;  %v2331_v2 = vmax.f32 %v1848_v42, 0.0 }
 0x535   :  { %v2334_v46 = vmax.f32 %v3685_v0, 0.0  ;;  %v1851_v51 = vpop.f32.mrb[119].mxu1 }
 0x536   :  { %v2332_v55 = vmax.f32 %v1851_v51, 0.0 }
 0x537   :  { %3412 = vmatpush3.bf16.msra.mxu0 %v4342_v43  ;;  %v2498_v4 = vpack.c.bf16 %v2334_v46, %v2333_v36 }
 0x538   :  { %3419 = vmatprep.subr.bf16.mxu0 %v2495_v7  ;;  %v2497_v13 = vpack.c.bf16 %v2332_v55, %v2331_v2 }
 0x53a   :  { %2824 = vmatmul.mubr.bf16.vlgmr.msra.gmra.mrb[88].mxu0 %v3166_v61  ;;  %v3688_v35 = vpop.f32.mrb[120].mxu1 }
 0x53b   :  { %3420 = vmatpush3.bf16.msra.mxu0 %v4401_v62  ;;  %v1864_v48 = vpop.f32.mrb[121].mxu1  ;;  %2863 = vmatprep.mubr.bf16.mxu0 %v3169_v33  ;;  %v2337_v23 = vmax.f32 %v3688_v35, 0.0 }
 0x53c   :  { %3421 = vmatprep.subr.bf16.mxu0 %v2496_v63  ;;  %v3689_v59 = vpop.f32.mrb[122].mxu1  ;;  %v2335_v38 = vmax.f32 %v1864_v48, 0.0 }
 0x53d   :  { %v2338_v52 = vmax.f32 %v3689_v59, 0.0  ;;  %v1867_v20 = vpop.f32.mrb[123].mxu1 }
 0x53e   :  { %v2336_v56 = vmax.f32 %v1867_v20, 0.0 }
 0x53f   :  { %3422 = vmatpush3.bf16.msra.mxu0 %v4398_v21  ;;  %v2500_v43 = vpack.c.bf16 %v2338_v52, %v2337_v23 }
 0x540   :  { %3423 = vmatprep.subr.bf16.mxu0 %v2497_v13  ;;  %v2499_v22 = vpack.c.bf16 %v2336_v56, %v2335_v38 }
 0x542   :  { %v3692_v60 = vpop.f32.mrb[124].mxu1 }
 0x543   :  { %3424 = vmatpush3.bf16.msra.mxu0 %v4423_v34  ;;  %v1880_v18 = vpop.f32.mrb[125].mxu1  ;;  %v2341_v10 = vmax.f32 %v3692_v60, 0.0 }
 0x544   :  { %3425 = vmatprep.subr.bf16.mxu0 %v2498_v4  ;;  %v3693_v62 = vpop.f32.mrb[126].mxu1  ;;  %v2339_v47 = vmax.f32 %v1880_v18, 0.0 }
 0x545   :  { %v2342_v27 = vmax.f32 %v3693_v62, 0.0  ;;  %v1883_v6 = vpop.f32.mrb[127].mxu1 }
 0x546   :  { %v2340_v1 = vmax.f32 %v1883_v6, 0.0 }
 0x547   :  { %3426 = vmatpush3.bf16.msra.mxu0 %v4418_v54  ;;  %v2502_v25 = vpack.c.bf16 %v2342_v27, %v2341_v10 }
 0x548   :  { %3427 = vmatprep.subr.bf16.mxu0 %v2499_v22  ;;  %v2501_v19 = vpack.c.bf16 %v2340_v1, %v2339_v47 }
 0x54a   :  { %v3696_v21 = vpop.f32.mrb[128].mxu1 }
 0x54b   :  { %3428 = vmatpush3.bf16.msra.mxu0 %v4431_v37  ;;  %v1896_v53 = vpop.f32.mrb[129].mxu1  ;;  %v2345_v34 = vmax.f32 %v3696_v21, 0.0 }
 0x54c   :  { %3429 = vmatprep.subr.bf16.mxu0 %v2500_v43  ;;  %v3697_v49 = vpop.f32.mrb[130].mxu1  ;;  %v2343_v58 = vmax.f32 %v1896_v53, 0.0 }
 0x54d   :  { %v2346_v50 = vmax.f32 %v3697_v49, 0.0  ;;  %v1899_v57 = vpop.f32.mrb[131].mxu1 }
 0x54e   :  { %v2344_v44 = vmax.f32 %v1899_v57, 0.0 }
 0x54f   :  { %3430 = vmatpush3.bf16.msra.mxu0 %v4428_v12  ;;  %v4468_v5 = vpack.c.bf16 %v2346_v50, %v2345_v34 }
 0x550   :  { %3431 = vmatprep.subr.bf16.mxu0 %v2501_v19  ;;  %v2503_v54 = vpack.c.bf16 %v2344_v44, %v2343_v58 }
 0x552   :  { %v3700_v17 = vpop.f32.mrb[132].mxu1 }
 0x553   :  { %3432 = vmatpush3.bf16.msra.mxu0 %v4439_v24  ;;  %v1912_v45 = vpop.f32.mrb[133].mxu1  ;;  %v2349_v12 = vmax.f32 %v3700_v17, 0.0 }
 0x554   :  { %3433 = vmatprep.subr.bf16.mxu0 %v2502_v25  ;;  %v3701_v37 = vpop.f32.mrb[134].mxu1  ;;  %v2347_v24 = vmax.f32 %v1912_v45, 0.0 }
 0x555   :  { %v2350_v15 = vmax.f32 %v3701_v37, 0.0  ;;  %v1915_v28 = vpop.f32.mrb[135].mxu1 }
 0x556   :  { %v2348_v40 = vmax.f32 %v1915_v28, 0.0 }
 0x557   :  { %3434 = vmatpush3.bf16.msra.mxu0 %v4436_v16  ;;  %v4484_v14 = vpack.c.bf16 %v2350_v15, %v2349_v12 }
 0x558   :  { %v2505_v39 = vpack.c.bf16 %v2348_v40, %v2347_v24 }
 0x55a   :  { %2864 = vmatmul.mubr.bf16.vlgmr.msra.gmra.mrb[92].mxu0 %v3168_v30  ;;  %v3704_v11 = vpop.f32.mrb[136].mxu1 }
 0x55b   :  { %v1928_v31 = vpop.f32.mrb[137].mxu1  ;;  %2903 = vmatprep.mubr.bf16.mxu0 %v3171_v9  ;;  %v2353_v7 = vmax.f32 %v3704_v11, 0.0 }
 0x55c   :  { %v3705_v63 = vpop.f32.mrb[138].mxu1  ;;  %v2351_v0 = vmax.f32 %v1928_v31, 0.0 }
 0x55d   :  { %v2354_v29 = vmax.f32 %v3705_v63, 0.0  ;;  %v1931_v42 = vpop.f32.mrb[139].mxu1 }
 0x55e   :  { %v2352_v3 = vmax.f32 %v1931_v42, 0.0 }
 0x55f   :  { %v4488_v26 = vpack.c.bf16 %v2354_v29, %v2353_v7 }
 0x560   :  { %v2507_v36 = vpack.c.bf16 %v2352_v3, %v2351_v0  ;;  %v4500_v3 = vld [vmem:[%s4551_s4 + $0x38] sm:$0xff] }
 0x562   :  { %v3708_v16 = vpop.f32.mrb[140].mxu1 }
 0x563   :  { %v1944_v46 = vpop.f32.mrb[141].mxu1  ;;  %v2357_v61 = vmax.f32 %v3708_v16, 0.0 }
 0x564   :  { %v3709_v51 = vpop.f32.mrb[142].mxu1  ;;  %v2355_v4 = vmax.f32 %v1944_v46, 0.0 }
 0x565   :  { %v2358_v2 = vmax.f32 %v3709_v51, 0.0  ;;  %v1947_v55 = vpop.f32.mrb[143].mxu1  ;;  %v3170_v51 = vcombine.low %v4474_v41, %v4479_v8  ;;  %v4517_v41 = vld [vmem:[%s4547_s2 + $0x18] sm:$0xff] }
 0x566   :  { %v2356_v33 = vmax.f32 %v1947_v55, 0.0 }
 0x567   :  { %v4490_v13 = vpack.c.bf16 %v2358_v2, %v2357_v61 }
 0x568   :  { %v2509_v35 = vpack.c.bf16 %v2356_v33, %v2355_v4 }
 0x56a   :  { %v3712_v48 = vpop.f32.mrb[144].mxu1 }
 0x56b   :  { %v1960_v59 = vpop.f32.mrb[145].mxu1  ;;  %v2361_v52 = vmax.f32 %v3712_v48, 0.0  ;;  %v3814_v48 = vmov 7  }
 0x56c   :  { %v3713_v23 = vpop.f32.mrb[146].mxu1  ;;  %v2359_v43 = vmax.f32 %v1960_v59, 0.0  ;;  %3787 = vset.pattern.permute.xlu1 %v3814_v48 }
 0x56d   :  { %v2362_v20 = vmax.f32 %v3713_v23, 0.0  ;;  %v1963_v38 = vpop.f32.mrb[147].mxu1  ;;  %v3325_v56 = vpop.f32.mrb[72].mxu0  ;;  %2952 = vperm.xlu1 %3787, %v4517_v41  }
 0x56e   :  { %v2360_v22 = vmax.f32 %v1963_v38, 0.0  ;;  %v3326_v60 = vpop.f32.mrb[73].mxu0 }
 0x56f   :  { %v2512_v18 = vpack.c.bf16 %v2362_v20, %v2361_v52  ;;  %v4492_v62 = vadd.f32 %v3326_v60, %v3325_v56  ;;  %v3328_v10 = vpop.f32.mrb[74].mxu0 }
 0x570   :  { %v2511_v27 = vpack.c.bf16 %v2360_v22, %v2359_v43  ;;  %v3329_v6 = vpop.f32.mrb[75].mxu0 }
 0x572   :  { %v3716_v47 = vpop.f32.mrb[148].mxu1  ;;  %3441 = vmatprep.subr.bf16.mxu0 %v2511_v27 }
 0x573   :  { %v1976_v1 = vpop.f32.mrb[149].mxu1  ;;  %3442 = vmatpush3.bf16.msra.mxu0 %v2503_v54  ;;  %v2365_v19 = vmax.f32 %v3716_v47, 0.0 }
 0x574   :  { %v3717_v25 = vpop.f32.mrb[150].mxu1  ;;  %3443 = vmatprep.subr.bf16.mxu0 %v2512_v18  ;;  %v2363_v49 = vmax.f32 %v1976_v1, 0.0 }
 0x575   :  { %v2366_v21 = vmax.f32 %v3717_v25, 0.0  ;;  %v1979_v53 = vpop.f32.mrb[151].mxu1 }
 0x576   :  { %v2364_v34 = vmax.f32 %v1979_v53, 0.0 }
 0x577   :  { %v2514_v50 = vpack.c.bf16 %v2366_v21, %v2365_v19  ;;  %3444 = vmatpush3.bf16.msra.mxu0 %v4468_v5 }
 0x578   :  { %v2513_v57 = vpack.c.bf16 %v2364_v34, %v2363_v49 }
 0x57a   :  { %v3720_v58 = vpop.f32.mrb[152].mxu1  ;;  %3445 = vmatprep.subr.bf16.mxu0 %v2513_v57 }
 0x57b   :  { %v1992_v44 = vpop.f32.mrb[153].mxu1  ;;  %3446 = vmatpush3.bf16.msra.mxu0 %v2505_v39  ;;  %v2369_v45 = vmax.f32 %v3720_v58, 0.0 }
 0x57c   :  { %v3721_v17 = vpop.f32.mrb[154].mxu1  ;;  %3447 = vmatprep.subr.bf16.mxu0 %v2514_v50  ;;  %v2367_v12 = vmax.f32 %v1992_v44, 0.0 }
 0x57d   :  { %v2370_v37 = vmax.f32 %v3721_v17, 0.0  ;;  %v1995_v54 = vpop.f32.mrb[155].mxu1 }
 0x57e   :  { %v2368_v15 = vmax.f32 %v1995_v54, 0.0 }
 0x57f   :  { %v2516_v28 = vpack.c.bf16 %v2370_v37, %v2369_v45  ;;  %3448 = vmatpush3.bf16.msra.mxu0 %v4484_v14 }
 0x580   :  { %v2515_v30 = vpack.c.bf16 %v2368_v15, %v2367_v12 }
 0x582   :  { %v3724_v24 = vpop.f32.mrb[156].mxu1  ;;  %3449 = vmatprep.subr.bf16.mxu0 %v2515_v30 }
 0x583   :  { %v2008_v40 = vpop.f32.mrb[157].mxu1  ;;  %3450 = vmatpush3.bf16.msra.mxu0 %v2507_v36  ;;  %v2373_v9 = vmax.f32 %v3724_v24, 0.0  ;;  %v4505_v36 = vld [vmem:[%s4551_s4 + $0x78] sm:$0xff] }
 0x584   :  { %v3725_v5 = vpop.f32.mrb[158].mxu1  ;;  %3451 = vmatprep.subr.bf16.mxu0 %v2516_v28  ;;  %v2371_v31 = vmax.f32 %v2008_v40, 0.0  ;;  %v3173_v4 = vcombine.high %v4500_v3, %v4505_v36 }
 0x585   :  { %v2374_v11 = vmax.f32 %v3725_v5, 0.0  ;;  %v2011_v39 = vpop.f32.mrb[159].mxu1 }
 0x586   :  { %v2372_v63 = vmax.f32 %v2011_v39, 0.0 }
 0x587   :  { %v2518_v7 = vpack.c.bf16 %v2374_v11, %v2373_v9  ;;  %3452 = vmatpush3.bf16.msra.mxu0 %v4488_v26 }
 0x588   :  { %v2517_v29 = vpack.c.bf16 %v2372_v63, %v2371_v31 }
 0x58a   :  { %3453 = vmatprep.subr.bf16.mxu0 %v2517_v29  ;;  %v3728_v42 = vpop.f32.mrb[160].mxu1 }
 0x58b   :  { %3454 = vmatpush3.bf16.msra.mxu0 %v2509_v35  ;;  %v2024_v14 = vpop.f32.mrb[161].mxu1  ;;  %v2377_v16 = vmax.f32 %v3728_v42, 0.0 }
 0x58c   :  { %3455 = vmatprep.subr.bf16.mxu0 %v2518_v7  ;;  %v3729_v0 = vpop.f32.mrb[162].mxu1  ;;  %v2375_v61 = vmax.f32 %v2024_v14, 0.0  ;;  %v3815_v14 = vmov 11  }
 0x58d   :  { %v2378_v46 = vmax.f32 %v3729_v0, 0.0  ;;  %v2027_v26 = vpop.f32.mrb[163].mxu1  ;;  %3789 = vset.pattern.permute.xlu1 %v3815_v14 }
 0x58e   :  { %v2376_v2 = vmax.f32 %v2027_v26, 0.0  ;;  %2982 = vperm.xlu1 %3789, %v4517_v41  }
 0x58f   :  { %3456 = vmatpush3.bf16.msra.mxu0 %v4490_v13  ;;  %v4510_v55 = vpack.c.bf16 %v2378_v46, %v2377_v16  ;;  %v3816_v46 = vmov 10  }
 0x590   :  { %v2519_v33 = vpack.c.bf16 %v2376_v2, %v2375_v61  ;;  %3788 = vset.pattern.permute.xlu0 %v3816_v46 }
 0x591   :  { %2977 = vperm.xlu0 %3788, %v4517_v41  }
 0x592   :  { %2904 = vmatmul.mubr.bf16.vlgmr.msra.gmra.mrb[96].mxu0 %v3170_v51  ;;  %v3732_v35 = vpop.f32.mrb[164].mxu1 }
 0x593   :  { %v2040_v59 = vpop.f32.mrb[165].mxu1  ;;  %2943 = vmatprep.mubr.bf16.mxu0 %v3173_v4  ;;  %v2381_v13 = vmax.f32 %v3732_v35, 0.0  ;;  %v3817_v35 = vmov 12  }
 0x594   :  { %v3733_v8 = vpop.f32.mrb[166].mxu1  ;;  %v2379_v20 = vmax.f32 %v2040_v59, 0.0  ;;  %3790 = vset.pattern.permute.xlu1 %v3817_v35 }
 0x595   :  { %v2382_v23 = vmax.f32 %v3733_v8, 0.0  ;;  %v2043_v52 = vpop.f32.mrb[167].mxu1  ;;  %2987 = vperm.xlu1 %3790, %v4517_v41  }
 0x596   :  { %v2380_v38 = vmax.f32 %v2043_v52, 0.0 }
 0x597   :  { %v4520_v56 = vpack.c.bf16 %v2382_v23, %v2381_v13 }
 0x598   :  { %v2521_v43 = vpack.c.bf16 %v2380_v38, %v2379_v20 }
 0x59a   :  { %v3736_v22 = vpop.f32.mrb[168].mxu1 }
 0x59b   :  { %v2056_v60 = vpop.f32.mrb[169].mxu1  ;;  %v2385_v10 = vmax.f32 %v3736_v22, 0.0 }
 0x59c   :  { %v3737_v18 = vpop.f32.mrb[170].mxu1  ;;  %v2383_v47 = vmax.f32 %v2056_v60, 0.0 }
 0x59d   :  { %v2386_v27 = vmax.f32 %v3737_v18, 0.0  ;;  %v2059_v6 = vpop.f32.mrb[171].mxu1 }
 0x59e   :  { %v2384_v1 = vmax.f32 %v2059_v6, 0.0 }
 0x59f   :  { %v4522_v25 = vpack.c.bf16 %v2386_v27, %v2385_v10 }
 0x5a0   :  { %v4524_v19 = vpack.c.bf16 %v2384_v1, %v2383_v47 }
 0x5a2   :  { %v3740_v21 = vpop.f32.mrb[172].mxu1 }
 0x5a3   :  { %v2072_v53 = vpop.f32.mrb[173].mxu1  ;;  %v2389_v34 = vmax.f32 %v3740_v21, 0.0 }
 0x5a4   :  { %v3741_v49 = vpop.f32.mrb[174].mxu1  ;;  %v2387_v58 = vmax.f32 %v2072_v53, 0.0 }
 0x5a5   :  { %v2390_v50 = vmax.f32 %v3741_v49, 0.0  ;;  %v2075_v57 = vpop.f32.mrb[175].mxu1  ;;  %v3172_v49 = vcombine.low %v4500_v3, %v4505_v36 }
 0x5a6   :  { %v2388_v44 = vmax.f32 %v2075_v57, 0.0 }
 0x5a7   :  { %v4526_v17 = vpack.c.bf16 %v2390_v50, %v2389_v34 }
 0x5a8   :  { %v4528_v45 = vpack.c.bf16 %v2388_v44, %v2387_v58  ;;  %v3818_v44 = vmov 13  }
 0x5a9   :  { %3791 = vset.pattern.permute.xlu0 %v3818_v44 }
 0x5aa   :  { %v3744_v37 = vpop.f32.mrb[176].mxu1  ;;  %2998 = vperm.xlu0 %3791, %v4517_v41  }
 0x5ab   :  { %v2088_v54 = vpop.f32.mrb[177].mxu1  ;;  %v2393_v15 = vmax.f32 %v3744_v37, 0.0 }
 0x5ac   :  { %v3745_v12 = vpop.f32.mrb[178].mxu1  ;;  %v2391_v40 = vmax.f32 %v2088_v54, 0.0 }
 0x5ad   :  { %v2394_v28 = vmax.f32 %v3745_v12, 0.0  ;;  %v2091_v30 = vpop.f32.mrb[179].mxu1  ;;  %v3347_v24 = vpop.f32.mrb[76].mxu0 }
 0x5ae   :  { %v2392_v5 = vmax.f32 %v2091_v30, 0.0  ;;  %v3348_v9 = vpop.f32.mrb[77].mxu0 }
 0x5af   :  { %v2528_v11 = vpack.c.bf16 %v2394_v28, %v2393_v15  ;;  %v3349_v39 = vadd.f32 %v3348_v9, %v3347_v24  ;;  %v3350_v31 = vpop.f32.mrb[78].mxu0 }
 0x5b0   :  { %v2527_v63 = vpack.c.bf16 %v2392_v5, %v2391_v40  ;;  %v3351_v7 = vpop.f32.mrb[79].mxu0 }
 0x5b1   :  { %v2706_v29 = vadd.f32 %v3349_v39, %v4492_v62 }
 0x5b2   :  { %v3748_v42 = vpop.f32.mrb[180].mxu1  ;;  %3463 = vmatprep.subr.bf16.mxu0 %v2527_v63 }
 0x5b3   :  { %v2104_v0 = vpop.f32.mrb[181].mxu1  ;;  %3464 = vmatpush3.bf16.msra.mxu0 %v2519_v33  ;;  %v2397_v26 = vmax.f32 %v3748_v42, 0.0 }
 0x5b4   :  { %v3749_v16 = vpop.f32.mrb[182].mxu1  ;;  %3465 = vmatprep.subr.bf16.mxu0 %v2528_v11  ;;  %v2395_v2 = vmax.f32 %v2104_v0, 0.0 }
 0x5b5   :  { %v2398_v51 = vmax.f32 %v3749_v16, 0.0  ;;  %v2107_v61 = vpop.f32.mrb[183].mxu1 }
 0x5b6   :  { %v2396_v4 = vmax.f32 %v2107_v61, 0.0 }
 0x5b7   :  { %v2530_v62 = vpack.c.bf16 %v2398_v51, %v2397_v26  ;;  %3466 = vmatpush3.bf16.msra.mxu0 %v4510_v55 }
 0x5b8   :  { %v2529_v48 = vpack.c.bf16 %v2396_v4, %v2395_v2 }
 0x5ba   :  { %v3752_v33 = vpop.f32.mrb[184].mxu1  ;;  %3467 = vmatprep.subr.bf16.mxu0 %v2529_v48 }
 0x5bb   :  { %v2120_v59 = vpop.f32.mrb[185].mxu1  ;;  %3468 = vmatpush3.bf16.msra.mxu0 %v2521_v43  ;;  %v2401_v13 = vmax.f32 %v3752_v33, 0.0 }
 0x5bc   :  { %v3753_v8 = vpop.f32.mrb[186].mxu1  ;;  %3469 = vmatprep.subr.bf16.mxu0 %v2530_v62  ;;  %v2399_v20 = vmax.f32 %v2120_v59, 0.0 }
 0x5bd   :  { %v2402_v23 = vmax.f32 %v3753_v8, 0.0  ;;  %v2123_v52 = vpop.f32.mrb[187].mxu1 }
 0x5be   :  { %v2400_v38 = vmax.f32 %v2123_v52, 0.0 }
 0x5bf   :  { %v2532_v22 = vpack.c.bf16 %v2402_v23, %v2401_v13  ;;  %3470 = vmatpush3.bf16.msra.mxu0 %v4520_v56 }
 0x5c0   :  { %v2531_v55 = vpack.c.bf16 %v2400_v38, %v2399_v20 }
 0x5c2   :  { %v3756_v60 = vpop.f32.mrb[188].mxu1  ;;  %3471 = vmatprep.subr.bf16.mxu0 %v2531_v55 }
 0x5c3   :  { %v2136_v18 = vpop.f32.mrb[189].mxu1  ;;  %3472 = vmatpush3.bf16.msra.mxu0 %v4524_v19  ;;  %v2405_v27 = vmax.f32 %v3756_v60, 0.0 }
 0x5c4   :  { %v3757_v10 = vpop.f32.mrb[190].mxu1  ;;  %3473 = vmatprep.subr.bf16.mxu0 %v2532_v22  ;;  %v2403_v47 = vmax.f32 %v2136_v18, 0.0 }
 0x5c5   :  { %v2406_v43 = vmax.f32 %v3757_v10, 0.0  ;;  %v2139_v6 = vpop.f32.mrb[191].mxu1 }
 0x5c6   :  { %v2404_v1 = vmax.f32 %v2139_v6, 0.0 }
 0x5c7   :  { %v2534_v21 = vpack.c.bf16 %v2406_v43, %v2405_v27  ;;  %3474 = vmatpush3.bf16.msra.mxu0 %v4522_v25 }
 0x5c8   :  { %v2533_v53 = vpack.c.bf16 %v2404_v1, %v2403_v47 }
 0x5ca   :  { %3475 = vmatprep.subr.bf16.mxu0 %v2533_v53 }
 0x5cb   :  { %3476 = vmatpush3.bf16.msra.mxu0 %v4528_v45 }
 0x5cc   :  { %3477 = vmatprep.subr.bf16.mxu0 %v2534_v21 }
 0x5cd   :  { %v3369_v56 = vpop.f32.mrb[80].mxu0 }
 0x5ce   :  { %v3370_v19 = vpop.f32.mrb[81].mxu0 }
 0x5cf   :  { %3478 = vmatpush3.bf16.msra.mxu0 %v4526_v17  ;;  %v3371_v34 = vadd.f32 %v3370_v19, %v3369_v56  ;;  %v3372_v50 = vpop.f32.mrb[82].mxu0 }
 0x5d0   :  { %v3373_v57 = vpop.f32.mrb[83].mxu0 }
 0x5d1   :  { %v2746_v58 = vadd.f32 %v3371_v34, %v2706_v29 }
 0x5d2   :  { %2944 = vmatmul.mubr.bf16.vlgmr.msra.gmra.mrb[100].mxu0 %v3172_v49 }
 0x5ec   :  { %v2953_v51 = vpop.permute.xlu1 %2952 }
 0x5ed   :  { %v3391_v25 = vpop.f32.mrb[84].mxu0 }
 0x5ee   :  { %v3392_v37 = vpop.f32.mrb[85].mxu0 }
 0x5ef   :  { %v3393_v45 = vadd.f32 %v3392_v37, %v3391_v25  ;;  %v3394_v54 = vpop.f32.mrb[86].mxu0 }
 0x5f0   :  { %v3395_v12 = vpop.f32.mrb[87].mxu0 }
 0x5f1   :  { %v2786_v15 = vadd.f32 %v3393_v45, %v2746_v58 }
 0x60d   :  { %v3413_v28 = vpop.f32.mrb[88].mxu0  ;;  %v2983_v6 = vpop.permute.xlu1 %2982 }
 0x60e   :  { %v3414_v3 = vpop.f32.mrb[89].mxu0 }
 0x60f   :  { %v3415_v36 = vadd.f32 %v3414_v3, %v3413_v28  ;;  %v3416_v30 = vpop.f32.mrb[90].mxu0 }
 0x610   :  { %v3417_v17 = vpop.f32.mrb[91].mxu0  ;;  %v2978_v47 = vpop.permute.xlu0 %2977 }
 0x611   :  { %v2826_v24 = vadd.f32 %v3415_v36, %v2786_v15 }
 0x614   :  { %v2988_v53 = vpop.permute.xlu1 %2987 }
 0x629   :  { %v2999_v44 = vpop.permute.xlu0 %2998 }
 0x62d   :  { %v3435_v40 = vpop.f32.mrb[92].mxu0 }
 0x62e   :  { %v3436_v5 = vpop.f32.mrb[93].mxu0 }
 0x62f   :  { %v3437_v9 = vadd.f32 %v3436_v5, %v3435_v40  ;;  %v3438_v11 = vpop.f32.mrb[94].mxu0 }
 0x630   :  { %v3439_v39 = vpop.f32.mrb[95].mxu0 }
 0x631   :  { %v2866_v31 = vadd.f32 %v3437_v9, %v2826_v24 }
 0x665   :  { %v3457_v63 = vpop.f32.mrb[96].mxu0 }
 0x666   :  { %v3458_v41 = vpop.f32.mrb[97].mxu0 }
 0x667   :  { %v3459_v7 = vadd.f32 %v3458_v41, %v3457_v63  ;;  %v3460_v29 = vpop.f32.mrb[98].mxu0 }
 0x668   :  { %v3461_v42 = vpop.f32.mrb[99].mxu0 }
 0x669   :  { %v2906_v14 = vadd.f32 %v3459_v7, %v2866_v31 }
 0x6a5   :  { %v3479_v0 = vpop.f32.mrb[100].mxu0 }
 0x6a6   :  { %v3480_v16 = vpop.f32.mrb[101].mxu0 }
 0x6a7   :  { %v3481_v46 = vadd.f32 %v3480_v16, %v3479_v0  ;;  %v3482_v26 = vpop.f32.mrb[102].mxu0 }
 0x6a8   :  { %v3483_v61 = vpop.f32.mrb[103].mxu0 }
 0x6a9   :  { %v2946_v2 = vadd.f32 %v3481_v46, %v2906_v14 }
 0x6ab   :  { %v2955_v4 = vadd.f32 %v2953_v51, %v2946_v2 }
 0x6ad   :  { %v2956_v62 = vadd.f32 %v2955_v4, %v3972_v32 }
 0x6af   :  { %v2957_v35 = vrot.slane %v2956_v62, 4 }
 0x6b1   :  { %v2958_v48 = vadd.f32 %v2957_v35, %v2956_v62 }
 0x6b3   :  { %v2959_v33 = vrot.slane %v2958_v48, 2 }
 0x6b5   :  { %v2960_v59 = vadd.f32 %v2959_v33, %v2958_v48 }
 0x6b7   :  { %v2961_v8 = vrot.slane %v2960_v59, 1 }
 0x6b9   :  { %v2962_v13 = vadd.f32 %v2961_v8, %v2960_v59 }
 0x6bb   :  { %v2963_v23 = vmul.f32 0.125, %v2962_v13 }
 0x6bd   :  { %v2964_v52 = vsub.f32 %v2956_v62, %v2963_v23 }
 0x6bf   :  { %v2965_v20 = vmul.f32 %v2964_v52, %v2964_v52 }
 0x6c1   :  { %v2966_v38 = vrot.slane %v2965_v20, 4 }
 0x6c3   :  { %v2967_v22 = vadd.f32 %v2966_v38, %v2965_v20 }
 0x6c5   :  { %v2968_v55 = vrot.slane %v2967_v22, 2 }
 0x6c7   :  { %v2969_v60 = vadd.f32 %v2968_v55, %v2967_v22 }
 0x6c9   :  { %v2970_v18 = vrot.slane %v2969_v60, 1 }
 0x6cb   :  { %v2971_v10 = vadd.f32 %v2970_v18, %v2969_v60 }
 0x6cd   :  { %v2972_v27 = vmul.f32 0.125, %v2971_v10 }
 0x6cf   :  { %v2973_v43 = vadd.f32 1e-05, %v2972_v27 }
 0x6d1   :  { %3798 = vrsqrt.f32 %v2973_v43 }
 0x6db   :  { %v3799_v32 = vpop.eup %3798 }
 0x6dc   :  { %v2975_v1 = vmul.f32 %v3799_v32, %v2964_v52 }
 0x6de   :  { %v2980_v21 = vmul.f32 %v2978_v47, %v2975_v1 }
 0x6e0   :  { %v2985_v56 = vadd.f32 %v2983_v6, %v2980_v21 }
 0x6e2   :  { %v2990_v49 = vmul.f32 %v2988_v53, %v2985_v56 }
 0x6e4   :  { %v2991_v19 = vrot.slane %v2990_v49, 4 }
 0x6e6   :  { %v2992_v34 = vadd.f32 %v2991_v19, %v2990_v49 }
 0x6e8   :  { %v2993_v50 = vrot.slane %v2992_v34, 2 }
 0x6ea   :  { %v2994_v57 = vadd.f32 %v2993_v50, %v2992_v34 }
 0x6ec   :  { %v2995_v58 = vrot.slane %v2994_v57, 1 }
 0x6ee   :  { %v2996_v25 = vadd.f32 %v2995_v58, %v2994_v57 }
 0x6f0   :  { %v3001_v37 = vadd.f32 %v2999_v44, %v2996_v25 }
 0x6f2   :  { %3002 = vst [vmem:[%s4552_s5] sm:$0x1] %v3001_v37 }

</bundles_post_ra>
